<compile_context>
chip_gen: v5e
topology: v5e:2x2
jax: 0.10.0
libtpu: 0.0.40
codegen_flags: <defaults>
</compile_context>

<pallas_src>
import functools
import math

import jax
import jax.numpy as jnp
from jax.experimental import pallas as pl
from jax.experimental.pallas import tpu as pltpu

EPS = 1e-5
_MASK_VALUE = -0.7 * float(jnp.finfo(jnp.float32).max)


# ------------------------------- helpers ------------------------------------


def _vmem_capacity_bytes():
    """Per-core VMEM capacity; conservative fallback if the query fails."""
    try:
        return int(pltpu.get_tpu_info().vmem_capacity_bytes)
    except Exception:
        return 64 * 1024 * 1024   # v7x-sized fallback — safe on every gen


def _vmem_limit_bytes():
    # Half the physical VMEM, capped at 48 MiB: raises v5e's 16 MiB scoped
    # default, gives 32 MiB on v7x's 64 MiB parts, 48 MiB on 128 MiB parts.
    return int(min(_vmem_capacity_bytes() // 2, 48 * 1024 * 1024))


def _round_up(x, m):
    return ((x + m - 1) // m) * m


def _pick_divisor(dim, candidates):
    """Largest candidate that evenly divides `dim`, else the full dim."""
    for c in candidates:
        if dim >= c and dim % c == 0:
            return c
    return dim


def _tile(dim, target, align):
    """Tile <= target aligned to `align`, or the full dim if it already fits."""
    if dim <= target:
        return dim                      # full-extent block dims are always legal
    return max(align, (target // align) * align)


# ------------------------------- LayerNorm ----------------------------------


def _layernorm_bias_kernel(x_ref, w_ref, b_ref, o_ref):
    x = x_ref[...].astype(jnp.float32)
    mean = jnp.mean(x, axis=-1, keepdims=True)
    xc = x - mean                                     # two-pass: no cancellation
    var = jnp.mean(xc * xc, axis=-1, keepdims=True)
    y = xc * jax.lax.rsqrt(var + EPS) * w_ref[...].astype(jnp.float32)
    y = y + b_ref[...].astype(jnp.float32)
    o_ref[...] = y.astype(o_ref.dtype)


def _layernorm_nobias_kernel(x_ref, w_ref, o_ref):
    x = x_ref[...].astype(jnp.float32)
    mean = jnp.mean(x, axis=-1, keepdims=True)
    xc = x - mean
    var = jnp.mean(xc * xc, axis=-1, keepdims=True)
    y = xc * jax.lax.rsqrt(var + EPS) * w_ref[...].astype(jnp.float32)
    o_ref[...] = y.astype(o_ref.dtype)


def layer_norm(x, weight, bias=None):
    """F.layer_norm(x, (hidden,), weight, bias, eps=1e-5) over the last axis."""
    orig_shape = x.shape
    hidden = orig_shape[-1]
    rows = 1
    for d in orig_shape[:-1]:
        rows *= d
    x2 = x.reshape(rows, hidden)
    w2 = weight.reshape(1, hidden)

    itemsize = jnp.dtype(x.dtype).itemsize
    sublanes = 16 if itemsize == 2 else 8          # bf16 packs 16 sublanes/vreg
    # LayerNorm is HBM-bandwidth bound: use large row tiles, sized off the
    # part's actual VMEM (~8 MiB tiles on 128 MiB parts, ~4 MiB on v7x).
    target_block_bytes = _vmem_capacity_bytes() // 16
    max_rows = max(sublanes, target_block_bytes // max(1, hidden * itemsize))
    block_rows = min(rows, 1024, max_rows)
    if block_rows < rows:
        block_rows = max(sublanes, (block_rows // sublanes) * sublanes)
    grid = (pl.cdiv(rows, block_rows),)

    in_specs = [
        pl.BlockSpec((block_rows, hidden), lambda i: (i, 0)),
        pl.BlockSpec((1, hidden), lambda i: (0, 0)),
    ]
    args = [x2, w2]
    if bias is not None:
        in_specs.append(pl.BlockSpec((1, hidden), lambda i: (0, 0)))
        args.append(bias.reshape(1, hidden))
        kernel = _layernorm_bias_kernel
    else:
        kernel = _layernorm_nobias_kernel           # skip the bias operand

    out = pl.pallas_call(
        kernel,
        out_shape=jax.ShapeDtypeStruct((rows, hidden), x.dtype),
        grid_spec=pltpu.PrefetchScalarGridSpec(
            num_scalar_prefetch=0,
            grid=grid,
            in_specs=in_specs,
            out_specs=pl.BlockSpec((block_rows, hidden), lambda i: (i, 0)),
        ),
        compiler_params=pltpu.CompilerParams(
            dimension_semantics=("parallel",),
            vmem_limit_bytes=_vmem_limit_bytes(),
        ),
    )(*args)
    return out.reshape(orig_shape)


# ------------------- Linear (+ fused GELU / fused residual) ------------------


def _gelu_tanh(x):
    # TODO(synk): nn.GELU() defaults to the exact erf formulation; erf is not a
    # guaranteed Mosaic lowering, so the tanh approximation is used in-kernel
    # (max abs deviation ~3e-4).
    c = math.sqrt(2.0 / math.pi)
    return 0.5 * x * (1.0 + jnp.tanh(c * (x + 0.044715 * x * x * x)))


def _linear_kernel(*refs, activation, has_bias, has_residual):
    it = iter(refs)
    x_ref = next(it)
    w_ref = next(it)
    b_ref = next(it) if has_bias else None
    r_ref = next(it) if has_residual else None
    o_ref = next(it)
    acc_ref = next(it)

    @pl.when(pl.program_id(2) == 0)
    def _init():
        acc_ref[...] = jnp.zeros(acc_ref.shape, acc_ref.dtype)

    acc_ref[...] += jnp.dot(x_ref[...], w_ref[...],
                            preferred_element_type=jnp.float32)

    @pl.when(pl.program_id(2) == pl.num_programs(2) - 1)
    def _finalize():
        out = acc_ref[...]
        if has_bias:
            out = out + b_ref[...].astype(jnp.float32)
        if activation == "gelu":
            out = _gelu_tanh(out)
        if has_residual:
            out = out + r_ref[...].astype(jnp.float32)
        o_ref[...] = out.astype(o_ref.dtype)


def linear(x, w, b=None, activation=None, residual=None):
    """y = x @ w (+ b) (+ GELU) (+ residual).  w is stored as (in, out)."""
    lead = x.shape[:-1]
    K = x.shape[-1]
    M = 1
    for d in lead:
        M *= d
    Kw, N = w.shape
    assert Kw == K
    x2 = x.reshape(M, K)

    # Large M tiles cut HBM weight re-streaming (weights are re-read M/tm
    # times).  M/N use cdiv grids (edge blocks masked on store); K must tile
    # exactly since it is the accumulation axis.
    tm = _tile(M, 512, 8)
    tn = _tile(N, 512, 128)
    tk = _pick_divisor(K, (512, 256, 128))
    # TODO(synk): a large K that is not a multiple of 128 falls back to a
    # single K block; fine for transformer widths (multiples of 128).
    grid = (pl.cdiv(M, tm), pl.cdiv(N, tn), K // tk)

    in_specs = [
        pl.BlockSpec((tm, tk), lambda i, j, k: (i, k)),
        pl.BlockSpec((tk, tn), lambda i, j, k: (k, j)),
    ]
    args = [x2, w]
    if b is not None:
        in_specs.append(pl.BlockSpec((1, tn), lambda i, j, k: (0, j)))
        args.append(b.reshape(1, N))
    if residual is not None:
        in_specs.append(pl.BlockSpec((tm, tn), lambda i, j, k: (i, j)))
        args.append(residual.reshape(M, N))

    kernel = functools.partial(_linear_kernel, activation=activation,
                               has_bias=b is not None,
                               has_residual=residual is not None)

    out = pl.pallas_call(
        kernel,
        out_shape=jax.ShapeDtypeStruct((M, N), x.dtype),
        grid_spec=pltpu.PrefetchScalarGridSpec(
            num_scalar_prefetch=0,
            grid=grid,
            in_specs=in_specs,
            out_specs=pl.BlockSpec((tm, tn), lambda i, j, k: (i, j)),
            scratch_shapes=[pltpu.VMEM((tm, tn), jnp.float32)],
        ),
        compiler_params=pltpu.CompilerParams(
            dimension_semantics=("parallel", "parallel", "arbitrary"),
            vmem_limit_bytes=_vmem_limit_bytes(),
        ),
    )(*args)
    return out.reshape(*lead, N)


# ------------------------ Causal flash attention -----------------------------


def _flash_causal_kernel(q_ref, k_ref, v_ref, o_ref, m_sc, l_sc, acc_sc, *,
                         scale, block_q, block_k, num_heads, head_dim):
    qi = pl.program_id(1)
    ki = pl.program_id(2)

    @pl.when(ki == 0)
    def _init():
        m_sc[...] = jnp.full(m_sc.shape, _MASK_VALUE, jnp.float32)
        l_sc[...] = jnp.zeros(l_sc.shape, jnp.float32)
        acc_sc[...] = jnp.zeros(acc_sc.shape, jnp.float32)

    # kv blocks strictly above the causal diagonal contribute nothing.
    @pl.when(ki * block_k < (qi + 1) * block_q)
    def _compute():
        q = q_ref[0]                      # (bq, C)  native dtype -> fast MXU
        k = k_ref[0]                      # (bk, C)
        v = v_ref[0]                      # (bk, C)
        row = qi * block_q + jax.lax.broadcasted_iota(
            jnp.int32, (block_q, block_k), 0)
        col = ki * block_k + jax.lax.broadcasted_iota(
            jnp.int32, (block_q, block_k), 1)
        causal = row >= col               # shared by all heads
        for h in range(num_heads):        # static unroll over heads
            lo, hi = h * head_dim, (h + 1) * head_dim
            q_h, k_h, v_h = q[:, lo:hi], k[:, lo:hi], v[:, lo:hi]
            s = jax.lax.dot_general(
                q_h, k_h, (((1,), (1,)), ((), ())),
                preferred_element_type=jnp.float32) * scale
            s = jnp.where(causal, s, _MASK_VALUE)
            m_prev = m_sc[h]                                  # (bq, 1)
            m_new = jnp.maximum(m_prev, jnp.max(s, axis=-1, keepdims=True))
            alpha = jnp.exp(m_prev - m_new)
            p = jnp.exp(s - m_new)
            l_sc[h] = alpha * l_sc[h] + jnp.sum(p, axis=-1, keepdims=True)
            pv = jax.lax.dot_general(
                p.astype(v_h.dtype), v_h, (((1,), (0,)), ((), ())),
                preferred_element_type=jnp.float32)
            acc_sc[h] = alpha * acc_sc[h] + pv
            m_sc[h] = m_new

    @pl.when(ki == pl.num_programs(2) - 1)
    def _finalize():
        outs = []
        for h in range(num_heads):
            inv_l = pl.reciprocal(l_sc[h], approx=True)       # EUP slot
            outs.append((acc_sc[h] * inv_l).astype(o_ref.dtype))
        # Single lane-dense (bq, C) store covering all heads.
        o_ref[0] = jnp.concatenate(outs, axis=-1)


def causal_attention(qkv, num_heads):
    """Causal MHA on the packed projection qkv (B, T, 3C) -> (B, T, C).

    Heads stay packed along the channel axis for inputs and output, so no HBM
    head transposes are needed and the output store is C lanes wide.
    """
    B, T, C3 = qkv.shape
    C = C3 // 3
    Dh = C // num_heads
    scale = 1.0 / math.sqrt(Dh)
    itemsize = jnp.dtype(qkv.dtype).itemsize
    limit = _vmem_limit_bytes()

    if T < 128:
        bq = bk = T                        # single block; full-dim blocks legal
    else:
        bq = 256 if T >= 256 else 128      # (on v5e a 128x128 sweep may win)
        bk = 128

        def _est(bq_, bk_):                # q + out + k + v, double buffered
            io = 2 * (2 * bq_ + 2 * bk_) * C * itemsize
            return io + bq_ * C * 4 + 2 * num_heads * bq_ * 4

        while bq > 128 and _est(bq, bk) > (3 * limit) // 4:
            bq //= 2
    ratio = bq // bk
    T_pad = _round_up(T, bq)               # also a multiple of bk (bk | bq)
    if T_pad != T:
        qkv = jnp.pad(qkv, ((0, 0), (0, T_pad - T), (0, 0)))
    nq, nk = T_pad // bq, T_pad // bk

    def kv_block(qi, ki):
        # Clamp above-diagonal steps to the last useful kv block: the block
        # index repeats, so Pallas elides the redundant K/V DMA.
        return jnp.minimum(ki, (qi + 1) * ratio - 1)

    if C % 128 == 0:
        # Read q/k/v straight out of the packed qkv projection (no jnp.split
        # copies): the last block coordinate selects the C-wide q/k/v slab.
        args = (qkv, qkv, qkv)
        q_map = lambda b, qi, ki: (b, qi, 0)
        k_map = lambda b, qi, ki: (b, kv_block(qi, ki), 1)
        v_map = lambda b, qi, ki: (b, kv_block(qi, ki), 2)
    else:
        q, k, v = jnp.split(qkv, 3, axis=-1)
        args = (q, k, v)
        q_map = lambda b, qi, ki: (b, qi, 0)
        k_map = lambda b, qi, ki: (b, kv_block(qi, ki), 0)
        v_map = lambda b, qi, ki: (b, kv_block(qi, ki), 0)

    kernel = functools.partial(_flash_causal_kernel, scale=scale, block_q=bq,
                               block_k=bk, num_heads=num_heads, head_dim=Dh)
    out = pl.pallas_call(
        kernel,
        out_shape=jax.ShapeDtypeStruct((B, T_pad, C), qkv.dtype),
        grid_spec=pltpu.PrefetchScalarGridSpec(
            num_scalar_prefetch=0,
            grid=(B, nq, nk),
            in_specs=[
                pl.BlockSpec((1, bq, C), q_map),
                pl.BlockSpec((1, bk, C), k_map),
                pl.BlockSpec((1, bk, C), v_map),
            ],
            out_specs=pl.BlockSpec((1, bq, C), lambda b, qi, ki: (b, qi, 0)),
            scratch_shapes=[
                pltpu.VMEM((num_heads, bq, 1), jnp.float32),   # running max
                pltpu.VMEM((num_heads, bq, 1), jnp.float32),   # running sum
                pltpu.VMEM((num_heads, bq, Dh), jnp.float32),  # accumulator
            ],
        ),
        compiler_params=pltpu.CompilerParams(
            dimension_semantics=("parallel", "parallel", "arbitrary"),
            vmem_limit_bytes=limit,
        ),
    )(*args)
    if T_pad != T:
        out = out[:, :T, :]
    return out


# ------------------------------ Block forward --------------------------------


def block_forward(x, p, num_heads):
    """x + attn(ln_1(x)); then + mlp(ln_2(x)).  Eval mode (dropout = 0)."""
    # TODO(synk): dropout layers are identity in eval mode; training-mode
    # dropout (pltpu PRNG) is not implemented.
    h = layer_norm(x, p["ln1_w"], p["ln1_b"])
    qkv = linear(h, p["attn_w_qkv"], p["attn_b_qkv"])            # (B, T, 3C)
    y = causal_attention(qkv, num_heads)                         # (B, T, C)
    x = linear(y, p["attn_w_proj"], p["attn_b_proj"], residual=x)   # fused +x
    h2 = layer_norm(x, p["ln2_w"], p["ln2_b"])
    h2 = linear(h2, p["mlp_w_fc"], p["mlp_b_fc"], activation="gelu")
    x = linear(h2, p["mlp_w_proj"], p["mlp_b_proj"], residual=x)     # fused +x
    return x


# --------------------------- pure-JAX reference -------------------------------


def _ref_layer_norm(x, w, b):
    mean = jnp.mean(x, axis=-1, keepdims=True)
    var = jnp.mean((x - mean) ** 2, axis=-1, keepdims=True)
    y = (x - mean) / jnp.sqrt(var + EPS) * w
    return y + b if b is not None else y


def _ref_block(x, p, num_heads):
    B, T, C = x.shape
    Dh = C // num_heads
    h = _ref_layer_norm(x, p["ln1_w"], p["ln1_b"])
    qkv = h @ p["attn_w_qkv"] + p["attn_b_qkv"]
    q, k, v = jnp.split(qkv, 3, axis=-1)

    def heads(t):
        return t.reshape(B, T, num_heads, Dh).transpose(0, 2, 1, 3)

    q, k, v = heads(q), heads(k), heads(v)
    att = jnp.einsum("bhqd,bhkd->bhqk", q, k) / math.sqrt(Dh)
    mask = jnp.tril(jnp.ones((T, T), dtype=bool))
    att = jnp.where(mask[None, None], att, -jnp.inf)
    att = jax.nn.softmax(att, axis=-1)
    y = jnp.einsum("bhqk,bhkd->bhqd", att, v)
    y = y.transpose(0, 2, 1, 3).reshape(B, T, C)
    y = y @ p["attn_w_proj"] + p["attn_b_proj"]
    x = x + y
    h2 = _ref_layer_norm(x, p["ln2_w"], p["ln2_b"])
    h2 = jax.nn.gelu(h2 @ p["mlp_w_fc"] + p["mlp_b_fc"], approximate=False)
    h2 = h2 @ p["mlp_w_proj"] + p["mlp_b_proj"]
    return x + h2


if __name__ == "__main__":
    # Small config: hidden=256, heads=2 (head_dim=128, lane-aligned head
    # slices), seq=128, batch=2, bias=True, dropout=0 (eval mode).
    B, T, C, H = 2, 128, 256, 2
    std = 0.02
    f32 = jnp.float32

    keys = jax.random.split(jax.random.PRNGKey(0), 14)
    p = {
        "ln1_w": 1.0 + 0.1 * jax.random.normal(keys[0], (C,), f32),
        "ln1_b": 0.1 * jax.random.normal(keys[1], (C,), f32),
        "attn_w_qkv": std * jax.random.normal(keys[2], (C, 3 * C), f32),
        "attn_b_qkv": 0.01 * jax.random.normal(keys[3], (3 * C,), f32),
        "attn_w_proj": std * jax.random.normal(keys[4], (C, C), f32),
        "attn_b_proj": 0.01 * jax.random.normal(keys[5], (C,), f32),
        "ln2_w": 1.0 + 0.1 * jax.random.normal(keys[6], (C,), f32),
        "ln2_b": 0.1 * jax.random.normal(keys[7], (C,), f32),
        "mlp_w_fc": std * jax.random.normal(keys[8], (C, 4 * C), f32),
        "mlp_b_fc": 0.01 * jax.random.normal(keys[9], (4 * C,), f32),
        "mlp_w_proj": std * jax.random.normal(keys[10], (4 * C, C), f32),
        "mlp_b_proj": 0.01 * jax.random.normal(keys[11], (C,), f32),
    }
    x = jax.random.normal(keys[12], (B, T, C), f32)

    y = jax.block_until_ready(block_forward(x, p, H))
    y_ref = _ref_block(x, p, H)
    assert y.shape == (B, T, C)
    assert bool(jnp.all(jnp.isfinite(y)))
    assert jnp.allclose(y, y_ref, atol=2e-2, rtol=2e-2), (
        "Block kernel mismatch vs reference: max abs err "
        f"{float(jnp.max(jnp.abs(y - y_ref)))}")

    # Non-multiple-of-block sequence length: exercises the padded / clamped-kv
    # attention path and the cdiv linear grids.
    x2 = jax.random.normal(keys[13], (B, 192, C), f32)
    y2 = jax.block_until_ready(block_forward(x2, p, H))
    y2_ref = _ref_block(x2, p, H)
    assert jnp.allclose(y2, y2_ref, atol=2e-2, rtol=2e-2), (
        "Padded-T Block kernel mismatch vs reference: max abs err "
        f"{float(jnp.max(jnp.abs(y2 - y2_ref)))}")

    # Also exercise the bias=None LayerNorm path (config.bias = False case).
    ln_nb = jax.block_until_ready(layer_norm(x, p["ln1_w"], None))
    ln_nb_ref = _ref_layer_norm(x, p["ln1_w"], None)
    assert jnp.allclose(ln_nb, ln_nb_ref, atol=1e-4, rtol=1e-4)

    print("KERNEL_OK")
</pallas_src>

<mosaic_0001>
module attributes {stable_mosaic.version = 11 : i64} {
  func.func @_layernorm_bias_kernel(%arg0: i32, %arg1: memref<256x256xf32, #tpu.memory_space<vmem>>, %arg2: memref<1x256xf32, #tpu.memory_space<vmem>>, %arg3: memref<1x256xf32, #tpu.memory_space<vmem>>, %arg4: memref<256x256xf32, #tpu.memory_space<vmem>>) attributes {dimension_semantics = [#tpu.dimension_semantics<parallel>], iteration_bounds = array<i64: 1>, scalar_prefetch = 0 : i64, scratch_operands = 0 : i64, tpu.core_type = #tpu.core_type<tc>, window_params = [{transform_indices = @transform_0, window_bounds = array<i64: 256, 256>}, {pipeline_mode = #tpu.pipeline_mode<synchronous>, transform_indices = @transform_1, window_bounds = array<i64: 1, 256>}, {pipeline_mode = #tpu.pipeline_mode<synchronous>, transform_indices = @transform_2, window_bounds = array<i64: 1, 256>}, {transform_indices = @transform_3, window_bounds = array<i64: 256, 256>}]} {
    %c0 = arith.constant 0 : index
    %c0_0 = arith.constant 0 : index
    %0 = vector.load %arg1[%c0, %c0_0] : memref<256x256xf32, #tpu.memory_space<vmem>>, vector<256x256xf32>
    %cst = arith.constant dense<0.000000e+00> : vector<256xf32>
    %1 = vector.multi_reduction <add>, %0, %cst [1] : vector<256x256xf32> to vector<256xf32>
    %2 = vector.shape_cast %1 : vector<256xf32> to vector<256x1xf32>
    %cst_1 = arith.constant 2.560000e+02 : f32
    %3 = vector.broadcast %cst_1 : f32 to vector<256x1xf32>
    %4 = arith.divf %2, %3 : vector<256x1xf32>
    %5 = vector.broadcast %4 : vector<256x1xf32> to vector<256x256xf32>
    %6 = arith.subf %0, %5 : vector<256x256xf32>
    %7 = arith.mulf %6, %6 : vector<256x256xf32>
    %cst_2 = arith.constant dense<0.000000e+00> : vector<256xf32>
    %8 = vector.multi_reduction <add>, %7, %cst_2 [1] : vector<256x256xf32> to vector<256xf32>
    %9 = vector.shape_cast %8 : vector<256xf32> to vector<256x1xf32>
    %cst_3 = arith.constant 2.560000e+02 : f32
    %10 = vector.broadcast %cst_3 : f32 to vector<256x1xf32>
    %11 = arith.divf %9, %10 : vector<256x1xf32>
    %cst_4 = arith.constant 9.99999974E-6 : f32
    %12 = vector.broadcast %cst_4 : f32 to vector<256x1xf32>
    %13 = arith.addf %11, %12 : vector<256x1xf32>
    %14 = math.rsqrt %13 : vector<256x1xf32>
    %15 = vector.broadcast %14 : vector<256x1xf32> to vector<256x256xf32>
    %16 = arith.mulf %6, %15 : vector<256x256xf32>
    %c0_5 = arith.constant 0 : index
    %c0_6 = arith.constant 0 : index
    %17 = vector.load %arg2[%c0_5, %c0_6] : memref<1x256xf32, #tpu.memory_space<vmem>>, vector<1x256xf32>
    %18 = vector.broadcast %17 : vector<1x256xf32> to vector<256x256xf32>
    %19 = arith.mulf %16, %18 : vector<256x256xf32>
    %c0_7 = arith.constant 0 : index
    %c0_8 = arith.constant 0 : index
    %20 = vector.load %arg3[%c0_7, %c0_8] : memref<1x256xf32, #tpu.memory_space<vmem>>, vector<1x256xf32>
    %21 = vector.broadcast %20 : vector<1x256xf32> to vector<256x256xf32>
    %22 = arith.addf %19, %21 : vector<256x256xf32>
    %c0_9 = arith.constant 0 : index
    %c0_10 = arith.constant 0 : index
    %23 = vector.load %arg4[%c0_9, %c0_10] : memref<256x256xf32, #tpu.memory_space<vmem>>, vector<256x256xf32>
    tpu.vector_store %arg4[%c0_9, %c0_10], %22 {strides = array<i32>} : memref<256x256xf32, #tpu.memory_space<vmem>>, vector<256x256xf32>,
    return
  }
  func.func @transform_0(%arg0: i32) -> (i32, i32) {
    %c0_i32 = arith.constant 0 : i32
    %c0_i32_0 = arith.constant 0 : i32
    return %arg0, %c0_i32 : i32, i32
  }
  func.func @transform_1(%arg0: i32) -> (i32, i32) {
    %c0_i32 = arith.constant 0 : i32
    %c0_i32_0 = arith.constant 0 : i32
    %c0_i32_1 = arith.constant 0 : i32
    return %c0_i32, %c0_i32_0 : i32, i32
  }
  func.func @transform_2(%arg0: i32) -> (i32, i32) {
    %c0_i32 = arith.constant 0 : i32
    %c0_i32_0 = arith.constant 0 : i32
    %c0_i32_1 = arith.constant 0 : i32
    return %c0_i32, %c0_i32_0 : i32, i32
  }
  func.func @transform_3(%arg0: i32) -> (i32, i32) {
    %c0_i32 = arith.constant 0 : i32
    %c0_i32_0 = arith.constant 0 : i32
    return %arg0, %c0_i32 : i32, i32
  }
}

</mosaic_0001>

<bundles_post_ra>
// kernel: tpu_custom_call.1
= control target key start
LH: loop header
LB: loop body
LE: loop exit
PB: predicated region body
PF: predicated region fallthrough
CT: control target
= control target key end

     0   :  { %8 = vsyncpa [#allocation3], 0  ;;  %s2493_s0 = inlined_call_operand.hbm [shape: f32[256,256], index: 0, kind: input, shape index: {}]   ;;  %s2494_s1 = inlined_call_operand.hbm [shape: f32[1,256], index: 1, kind: input, shape index: {}]   ;;  %s2495_s2 = inlined_call_operand.hbm [shape: f32[1,256], index: 2, kind: input, shape index: {}]   ;;  %s2496_s3 = inlined_call_operand.hbm [shape: f32[256,256], index: 3, kind: output, shape index: {}]  }
   0x1   :  { %9 = vsyncpa [#allocation6], 0  ;;  %s29_s14 = sshll.u32 %s2494_s1, 4  ;;  %s30_s14 = int_to_ptr.hbm [resolvable:$true] %s29_s14 }
   0x2   :  { %10 = vsyncpa [#allocation4], 0  ;;  %s1328_s15 = smov [#allocation5]   ;;  %s15_s19 = sshll.u32 %s2493_s0, 4  ;;  %s16_s19 = int_to_ptr.hbm [resolvable:$true] %s15_s19 }
   0x3   :  { %s31_s16 = sshll.u32 %s1328_s15, 4  ;;  %s1329_s20 = smov [#allocation2]   ;;  %s32_s16 = int_to_ptr.vmem [resolvable:$true] %s31_s16 }
   0x4   :  { %34 = dma.hbm_to_vmem [thread:$0]  %s30_s14, 32, %s32_s16, [#allocation6]  }
   0x5   :  { %s17_s21 = sshll.u32 %s1329_s20, 4  ;;  %s1330_s22 = smov 256   ;;  %s18_s21 = int_to_ptr.vmem [resolvable:$true] %s17_s21 }
   0x6   :  { %s1331_s23 = smov 16   ;;  %s40_s25 = sshll.u32 %s2495_s2, 4  ;;  %s41_s25 = int_to_ptr.hbm [resolvable:$true] %s40_s25 }
   0x7   :  { %23 = dma.hbm_to_vmem [thread:$0]  %s16_s19, 8192, %s18_s21, [#allocation3], %s1330_s22, %s1330_s22, %s1331_s23  }
   0x8   :  { %s1332_s26 = smov [#allocation7]  }
   0x9   :  { %s42_s27 = sshll.u32 %s1332_s26, 4  ;;  %s43_s27 = int_to_ptr.vmem [resolvable:$true] %s42_s27 }
   0xa   :  { %45 = dma.hbm_to_vmem [thread:$0]  %s41_s25, 32, %s43_s27, [#allocation6]  }
   0xb   :  { %1322 = dma.done.wait [#allocation3], 8192  }
   0xc   :  { %1323 = vsyncadd [#allocation3], 4294959104 }
   0xd   :  { %1324 = dma.done.wait [#allocation6], 64  }
   0xe   :  { %1325 = vsyncadd [#allocation6], 4294967232  ;;  %v1367_v0 = vld [vmem:[#allocation2 + $0x40] sm:$0xff]  ;;  %v1369_v1 = vld [vmem:[#allocation2 + $0x48] sm:$0xff]  ;;  %s1334_s0 = smov [#allocation8]   ;;  %s1139_s30 = sshll.u32 %s2496_s3, 4  ;;  %s1140_s30 = int_to_ptr.hbm [resolvable:$true] %s1139_s30 }
   0xf   :  { %v1371_v2 = vld [vmem:[#allocation2 + $0x20] sm:$0xff]  ;;  %v134_v3 = vadd.f32 %v1369_v1, %v1367_v0  ;;  %v1375_v4 = vld [vmem:[#allocation2 + $0x28] sm:$0xff]  ;;  %v1385_v9 = vld [vmem:[#allocation2 + $0x50] sm:$0xff]  ;;  %s1137_s2 = sshll.u32 %s1334_s0, 4  ;;  %s1138_s2 = int_to_ptr.vmem [resolvable:$true] %s1137_s2 }
  0x10   :  { %v1377_v5 = vld [vmem:[#allocation2] sm:$0xff]  ;;  %v1379_v6 = vld [vmem:[#allocation2 + $0x8] sm:$0xff]  ;;  %v128_v7 = vadd.f32 %v1375_v4, %v1371_v2  ;;  %v1387_v10 = vld [vmem:[#allocation2 + $0x58] sm:$0xff] }
  0x11   :  { %v122_v8 = vadd.f32 %v1379_v6, %v1377_v5  ;;  %135 = vadd.xlane.f32.xlu2 %v134_v3  ;;  %v1389_v11 = vld [vmem:[#allocation2 + $0x30] sm:$0xff]  ;;  %v1391_v12 = vld [vmem:[#allocation2 + $0x38] sm:$0xff]  ;;  %v137_v15 = vadd.f32 %v1387_v10, %v1385_v9  ;;  %v1403_v18 = vld [vmem:[#allocation2 + $0x80] sm:$0xff] }
  0x12   :  { %129 = vadd.xlane.f32.xlu1 %v128_v7  ;;  %v1393_v13 = vld [vmem:[#allocation2 + $0x10] sm:$0xff]  ;;  %v1395_v14 = vld [vmem:[#allocation2 + $0x18] sm:$0xff]  ;;  %v131_v16 = vadd.f32 %v1391_v12, %v1389_v11  ;;  %v1405_v19 = vld [vmem:[#allocation2 + $0x88] sm:$0xff] }
  0x13   :  { %123 = vadd.xlane.f32.xlu0 %v122_v8  ;;  %v125_v17 = vadd.f32 %v1395_v14, %v1393_v13  ;;  %v1407_v20 = vld [vmem:[#allocation2 + $0x60] sm:$0xff]  ;;  %v1409_v21 = vld [vmem:[#allocation2 + $0x68] sm:$0xff]  ;;  %v1411_v22 = vld [vmem:[#allocation2 + $0x70] sm:$0xff]  ;;  %v146_v24 = vadd.f32 %v1405_v19, %v1403_v18 }
  0x14   :  { %v1413_v23 = vld [vmem:[#allocation2 + $0x78] sm:$0xff]  ;;  %v140_v25 = vadd.f32 %v1409_v21, %v1407_v20  ;;  %v1421_v27 = vld [vmem:[#allocation2 + $0xb0] sm:$0xff]  ;;  %v1429_v31 = vld [vmem:[#allocation2 + $0xa0] sm:$0xff] }
  0x15   :  { %v143_v26 = vadd.f32 %v1413_v23, %v1411_v22  ;;  %v1423_v28 = vld [vmem:[#allocation2 + $0xb8] sm:$0xff]  ;;  %v1425_v29 = vld [vmem:[#allocation2 + $0x90] sm:$0xff]  ;;  %v1431_v32 = vld [vmem:[#allocation2 + $0xa8] sm:$0xff] }
  0x16   :  { %v1427_v30 = vld [vmem:[#allocation2 + $0x98] sm:$0xff]  ;;  %v155_v33 = vadd.f32 %v1423_v28, %v1421_v27  ;;  %v152_v35 = vadd.f32 %v1431_v32, %v1429_v31  ;;  %v1439_v36 = vld [vmem:[#allocation2 + $0xe0] sm:$0xff]  ;;  %v1441_v37 = vld [vmem:[#allocation2 + $0xe8] sm:$0xff] }
  0x17   :  { %v149_v34 = vadd.f32 %v1427_v30, %v1425_v29  ;;  %v1443_v38 = vld [vmem:[#allocation2 + $0xc0] sm:$0xff]  ;;  %v1445_v39 = vld [vmem:[#allocation2 + $0xc8] sm:$0xff]  ;;  %v1447_v40 = vld [vmem:[#allocation2 + $0xd0] sm:$0xff]  ;;  %v164_v42 = vadd.f32 %v1441_v37, %v1439_v36 }
  0x18   :  { %v1449_v41 = vld [vmem:[#allocation2 + $0xd8] sm:$0xff]  ;;  %v158_v43 = vadd.f32 %v1445_v39, %v1443_v38  ;;  %v1457_v45 = vld [vmem:[#allocation2 + $0x110] sm:$0xff]  ;;  %v1465_v49 = vld [vmem:[#allocation2 + $0x100] sm:$0xff] }
  0x19   :  { %138 = vadd.xlane.f32.xlu2 %v137_v15  ;;  %v161_v44 = vadd.f32 %v1449_v41, %v1447_v40  ;;  %v1459_v46 = vld [vmem:[#allocation2 + $0x118] sm:$0xff]  ;;  %v1461_v47 = vld [vmem:[#allocation2 + $0xf0] sm:$0xff]  ;;  %v1467_v50 = vld [vmem:[#allocation2 + $0x108] sm:$0xff] }
  0x1a   :  { %132 = vadd.xlane.f32.xlu1 %v131_v16  ;;  %v1463_v48 = vld [vmem:[#allocation2 + $0xf8] sm:$0xff]  ;;  %v173_v51 = vadd.f32 %v1459_v46, %v1457_v45  ;;  %v170_v53 = vadd.f32 %v1467_v50, %v1465_v49  ;;  %v1475_v54 = vld [vmem:[#allocation2 + $0x140] sm:$0xff]  ;;  %v1477_v55 = vld [vmem:[#allocation2 + $0x148] sm:$0xff] }
  0x1b   :  { %126 = vadd.xlane.f32.xlu0 %v125_v17  ;;  %v167_v52 = vadd.f32 %v1463_v48, %v1461_v47  ;;  %v1479_v56 = vld [vmem:[#allocation2 + $0x120] sm:$0xff]  ;;  %v1481_v57 = vld [vmem:[#allocation2 + $0x128] sm:$0xff]  ;;  %v1483_v58 = vld [vmem:[#allocation2 + $0x130] sm:$0xff]  ;;  %v182_v60 = vadd.f32 %v1477_v55, %v1475_v54 }
  0x1c   :  { %v1485_v59 = vld [vmem:[#allocation2 + $0x138] sm:$0xff]  ;;  %v176_v61 = vadd.f32 %v1481_v57, %v1479_v56  ;;  %v1493_v63 = vld [vmem:[#allocation2 + $0x170] sm:$0xff]  ;;  %v1501_v15 = vld [vmem:[#allocation2 + $0x160] sm:$0xff] }
  0x1d   :  { %v179_v62 = vadd.f32 %v1485_v59, %v1483_v58  ;;  %v1495_v3 = vld [vmem:[#allocation2 + $0x178] sm:$0xff]  ;;  %v1497_v7 = vld [vmem:[#allocation2 + $0x150] sm:$0xff]  ;;  %v1503_v16 = vld [vmem:[#allocation2 + $0x168] sm:$0xff] }
  0x1e   :  { %v1499_v8 = vld [vmem:[#allocation2 + $0x158] sm:$0xff]  ;;  %v191_v17 = vadd.f32 %v1495_v3, %v1493_v63 }
  0x21   :  { %147 = vadd.xlane.f32.xlu2 %v146_v24  ;;  %v185_v24 = vadd.f32 %v1499_v8, %v1497_v7 }
  0x22   :  { %144 = vadd.xlane.f32.xlu1 %v143_v26  ;;  %v1511_v26 = vld [vmem:[#allocation2 + $0x1a0] sm:$0xff] }
  0x23   :  { %141 = vadd.xlane.f32.xlu0 %v140_v25  ;;  %v188_v25 = vadd.f32 %v1503_v16, %v1501_v15  ;;  %2547 = vst [vmem:[#allocation12_spill] sm:$0xff] %v1511_v26 }
  0x29   :  { %156 = vadd.xlane.f32.xlu2 %v155_v33  ;;  %v1513_v33 = vld [vmem:[#allocation2 + $0x1a8] sm:$0xff] }
  0x2a   :  { %153 = vadd.xlane.f32.xlu1 %v152_v35  ;;  %2548 = vst [vmem:[#allocation13_spill] sm:$0xff] %v1513_v33  ;;  %v1517_v35 = vld [vmem:[#allocation2 + $0x188] sm:$0xff] }
  0x2b   :  { %150 = vadd.xlane.f32.xlu0 %v149_v34  ;;  %v1515_v34 = vld [vmem:[#allocation2 + $0x180] sm:$0xff]  ;;  %2550 = vst [vmem:[#allocation15_spill] sm:$0xff] %v1517_v35 }
  0x2c   :  { %2549 = vst [vmem:[#allocation14_spill] sm:$0xff] %v1515_v34 }
  0x31   :  { %165 = vadd.xlane.f32.xlu2 %v164_v42  ;;  %v1519_v42 = vld [vmem:[#allocation2 + $0x190] sm:$0xff] }
  0x32   :  { %162 = vadd.xlane.f32.xlu1 %v161_v44  ;;  %2551 = vst [vmem:[#allocation16_spill] sm:$0xff] %v1519_v42  ;;  %v200_v44 = vadd.f32 %v1513_v33, %v1511_v26 }
  0x33   :  { %159 = vadd.xlane.f32.xlu0 %v158_v43  ;;  %v1521_v43 = vld [vmem:[#allocation2 + $0x198] sm:$0xff] }
  0x34   :  { %2552 = vst [vmem:[#allocation17_spill] sm:$0xff] %v1521_v43 }
  0x39   :  { %174 = vadd.xlane.f32.xlu2 %v173_v51  ;;  %v194_v51 = vadd.f32 %v1517_v35, %v1515_v34  ;;  %v1553_v35 = vld [vmem:[#allocation2 + $0x1f8] sm:$0xff] }
  0x3a   :  { %171 = vadd.xlane.f32.xlu1 %v170_v53  ;;  %v1529_v53 = vld [vmem:[#allocation2 + $0x1d0] sm:$0xff] }
  0x3b   :  { %168 = vadd.xlane.f32.xlu0 %v167_v52  ;;  %v197_v52 = vadd.f32 %v1521_v43, %v1519_v42  ;;  %2553 = vst [vmem:[#allocation18_spill] sm:$0xff] %v1529_v53  ;;  %v1549_v43 = vld [vmem:[#allocation2 + $0x1e8] sm:$0xff]  ;;  %v1551_v42 = vld [vmem:[#allocation2 + $0x1f0] sm:$0xff] }
  0x3c   :  { %2560 = vst [vmem:[#allocation25_spill] sm:$0xff] %v1549_v43 }
  0x41   :  { %183 = vadd.xlane.f32.xlu2 %v182_v60  ;;  %v1531_v60 = vld [vmem:[#allocation2 + $0x1d8] sm:$0xff] }
  0x42   :  { %180 = vadd.xlane.f32.xlu1 %v179_v62  ;;  %2554 = vst [vmem:[#allocation19_spill] sm:$0xff] %v1531_v60  ;;  %v1535_v62 = vld [vmem:[#allocation2 + $0x1b8] sm:$0xff] }
  0x43   :  { %177 = vadd.xlane.f32.xlu0 %v176_v61  ;;  %v1533_v61 = vld [vmem:[#allocation2 + $0x1b0] sm:$0xff]  ;;  %2556 = vst [vmem:[#allocation21_spill] sm:$0xff] %v1535_v62 }
  0x44   :  { %2555 = vst [vmem:[#allocation20_spill] sm:$0xff] %v1533_v61 }
  0x49   :  { %192 = vadd.xlane.f32.xlu2 %v191_v17  ;;  %v1537_v17 = vld [vmem:[#allocation2 + $0x1c0] sm:$0xff] }
  0x4a   :  { %189 = vadd.xlane.f32.xlu1 %v188_v25  ;;  %2557 = vst [vmem:[#allocation22_spill] sm:$0xff] %v1537_v17  ;;  %v209_v25 = vadd.f32 %v1531_v60, %v1529_v53 }
  0x4b   :  { %186 = vadd.xlane.f32.xlu0 %v185_v24  ;;  %v1539_v24 = vld [vmem:[#allocation2 + $0x1c8] sm:$0xff] }
  0x4c   :  { %2558 = vst [vmem:[#allocation23_spill] sm:$0xff] %v1539_v24 }
  0x51   :  { %201 = vadd.xlane.f32.xlu2 %v200_v44  ;;  %v203_v44 = vadd.f32 %v1535_v62, %v1533_v61  ;;  %v215_v62 = vadd.f32 %v1553_v35, %v1551_v42 }
  0x52   :  { %198 = vadd.xlane.f32.xlu1 %v197_v52  ;;  %v1547_v52 = vld [vmem:[#allocation2 + $0x1e0] sm:$0xff] }
  0x53   :  { %195 = vadd.xlane.f32.xlu0 %v194_v51  ;;  %v206_v51 = vadd.f32 %v1539_v24, %v1537_v17  ;;  %2559 = vst [vmem:[#allocation24_spill] sm:$0xff] %v1547_v52  ;;  %v212_v60 = vadd.f32 %v1549_v43, %v1547_v52  ;;  %v1333_v24 = vmov 256.0  }
  0x54   :  { %1160 = vrcp.f32 %v1333_v24 }
  0x59   :  { %210 = vadd.xlane.f32.xlu2 %v209_v25 }
  0x5a   :  { %207 = vadd.xlane.f32.xlu1 %v206_v51  ;;  %v1161_v25 = vpop.eup %1160 }
  0x5b   :  { %204 = vadd.xlane.f32.xlu0 %v203_v44  ;;  %v219_v44 = vmul.f32 256.0, %v1161_v25  ;;  %vm223_vm0 = vweird.f32 %v1161_v25 }
  0x5d   :  { %v220_v51 = vsub.f32 1.0, %v219_v44 }
  0x5f   :  { %v221_v17 = vmul.f32 %v1161_v25, %v220_v51 }
  0x61   :  { %v222_v61 = vadd.f32 %v1161_v25, %v221_v17 }
  0x62   :  { %216 = vadd.xlane.f32.xlu1 %v215_v62 }
  0x63   :  { %213 = vadd.xlane.f32.xlu0 %v212_v60  ;;  %v1559_v53 = vsel %vm223_vm0, %v1161_v25, %v222_v61 }
  0x84   :  { %v136_v34 = vpop.xlane.xlu2 %135 }
  0x85   :  { %v130_v33 = vpop.xlane.xlu1 %129 }
  0x86   :  { %v124_v26 = vpop.xlane.xlu0 %123  ;;  %v227_v43 = vmul.f32 %v1559_v53, %v130_v33 }
  0x87   :  { %v225_v52 = vmul.f32 %v1559_v53, %v124_v26 }
  0x88   :  { %v1564_v60 = vsub.f32 %v1371_v2, %v227_v43  ;;  %v1567_v62 = vsub.f32 %v1375_v4, %v227_v43 }
  0x89   :  { %v1570_v24 = vsub.f32 %v1377_v5, %v225_v52  ;;  %v1573_v17 = vsub.f32 %v1379_v6, %v225_v52 }
  0x8a   :  { %2561 = vst [vmem:[#allocation26_spill] sm:$0xff] %v1567_v62  ;;  %v325_v61 = vmul.f32 %v1564_v60, %v1564_v60  ;;  %v326_v33 = vmul.f32 %v1567_v62, %v1567_v62  ;;  %v229_v62 = vmul.f32 %v1559_v53, %v136_v34 }
  0x8b   :  { %2562 = vst [vmem:[#allocation27_spill] sm:$0xff] %v1570_v24  ;;  %v321_v26 = vmul.f32 %v1570_v24, %v1570_v24  ;;  %v322_v2 = vmul.f32 %v1573_v17, %v1573_v17 }
  0x8c   :  { %2563 = vst [vmem:[#allocation28_spill] sm:$0xff] %v1573_v17  ;;  %v139_v4 = vpop.xlane.xlu2 %138  ;;  %v391_v43 = vadd.f32 %v326_v33, %v325_v61 }
  0x8d   :  { %v385_v25 = vadd.f32 %v322_v2, %v321_v26  ;;  %v230_v5 = vmul.f32 %v1559_v53, %v139_v4  ;;  %v133_v44 = vpop.xlane.xlu1 %132  ;;  %v1621_v4 = vsub.f32 %v1369_v1, %v229_v62 }
  0x8e   :  { %v127_v6 = vpop.xlane.xlu0 %126  ;;  %v228_v52 = vmul.f32 %v1559_v53, %v133_v44  ;;  %392 = vadd.xlane.f32.xlu1 %v391_v43 }
  0x8f   :  { %v226_v51 = vmul.f32 %v1559_v53, %v127_v6  ;;  %386 = vadd.xlane.f32.xlu2 %v385_v25  ;;  %v1588_v24 = vsub.f32 %v1385_v9, %v230_v5  ;;  %v1591_v17 = vsub.f32 %v1387_v10, %v230_v5 }
  0x90   :  { %v1594_v61 = vsub.f32 %v1389_v11, %v228_v52  ;;  %v1597_v33 = vsub.f32 %v1391_v12, %v228_v52 }
  0x91   :  { %v1600_v26 = vsub.f32 %v1393_v13, %v226_v51  ;;  %v1603_v2 = vsub.f32 %v1395_v14, %v226_v51  ;;  %v331_v34 = vmul.f32 %v1588_v24, %v1588_v24  ;;  %v332_v9 = vmul.f32 %v1591_v17, %v1591_v17 }
  0x92   :  { %2564 = vst [vmem:[#allocation29_spill] sm:$0xff] %v1597_v33  ;;  %v327_v10 = vmul.f32 %v1594_v61, %v1594_v61  ;;  %v328_v11 = vmul.f32 %v1597_v33, %v1597_v33  ;;  %v1618_v14 = vsub.f32 %v1367_v0, %v229_v62 }
  0x93   :  { %2565 = vst [vmem:[#allocation30_spill] sm:$0xff] %v1603_v2  ;;  %v323_v12 = vmul.f32 %v1600_v26, %v1600_v26  ;;  %v324_v13 = vmul.f32 %v1603_v2, %v1603_v2  ;;  %v400_v43 = vadd.f32 %v332_v9, %v331_v34  ;;  %v330_v34 = vmul.f32 %v1621_v4, %v1621_v4 }
  0x94   :  { %v148_v25 = vpop.xlane.xlu2 %147  ;;  %v394_v5 = vadd.f32 %v328_v11, %v327_v10  ;;  %v329_v62 = vmul.f32 %v1618_v14, %v1618_v14 }
  0x95   :  { %v388_v44 = vadd.f32 %v324_v13, %v323_v12  ;;  %v233_v6 = vmul.f32 %v1559_v53, %v148_v25  ;;  %v145_v51 = vpop.xlane.xlu1 %144 }
  0x96   :  { %v142_v52 = vpop.xlane.xlu0 %141  ;;  %401 = vadd.xlane.f32.xlu1 %v400_v43  ;;  %v232_v2 = vmul.f32 %v1559_v53, %v145_v51 }
  0x97   :  { %v231_v33 = vmul.f32 %v1559_v53, %v142_v52  ;;  %395 = vadd.xlane.f32.xlu2 %v394_v5  ;;  %v1627_v0 = vsub.f32 %v1403_v18, %v233_v6  ;;  %v1630_v1 = vsub.f32 %v1405_v19, %v233_v6  ;;  %389 = vadd.xlane.f32.xlu0 %v388_v44 }
  0x98   :  { %v1647_v11 = vsub.f32 %v1411_v22, %v232_v2 }
  0x99   :  { %v1637_v9 = vsub.f32 %v1407_v20, %v231_v33  ;;  %v1640_v10 = vsub.f32 %v1409_v21, %v231_v33  ;;  %v337_v18 = vmul.f32 %v1627_v0, %v1627_v0  ;;  %v338_v19 = vmul.f32 %v1630_v1, %v1630_v1 }
  0x9a   :  { %v1654_v20 = vsub.f32 %v1413_v23, %v232_v2  ;;  %v397_v33 = vadd.f32 %v330_v34, %v329_v62  ;;  %v335_v52 = vmul.f32 %v1647_v11, %v1647_v11 }
  0x9b   :  { %v333_v12 = vmul.f32 %v1637_v9, %v1637_v9  ;;  %v334_v13 = vmul.f32 %v1640_v10, %v1640_v10  ;;  %v409_v21 = vadd.f32 %v338_v19, %v337_v18 }
  0x9c   :  { %v157_v43 = vpop.xlane.xlu2 %156  ;;  %v336_v62 = vmul.f32 %v1654_v20, %v1654_v20 }
  0x9d   :  { %v403_v25 = vadd.f32 %v334_v13, %v333_v12  ;;  %v236_v5 = vmul.f32 %v1559_v53, %v157_v43  ;;  %v154_v6 = vpop.xlane.xlu1 %153 }
  0x9e   :  { %v151_v44 = vpop.xlane.xlu0 %150  ;;  %410 = vadd.xlane.f32.xlu1 %v409_v21  ;;  %v235_v2 = vmul.f32 %v1559_v53, %v154_v6  ;;  %v406_v21 = vadd.f32 %v336_v62, %v335_v52 }
  0x9f   :  { %v234_v22 = vmul.f32 %v1559_v53, %v151_v44  ;;  %404 = vadd.xlane.f32.xlu2 %v403_v25  ;;  %v1661_v51 = vsub.f32 %v1421_v27, %v236_v5  ;;  %v1664_v23 = vsub.f32 %v1423_v28, %v236_v5  ;;  %398 = vadd.xlane.f32.xlu0 %v397_v33 }
  0xa0   :  { %v1684_v13 = vsub.f32 %v1429_v31, %v235_v2 }
  0xa1   :  { %v1670_v34 = vsub.f32 %v1425_v29, %v234_v22  ;;  %v1673_v18 = vsub.f32 %v1427_v30, %v234_v22  ;;  %v343_v19 = vmul.f32 %v1661_v51, %v1661_v51  ;;  %v344_v27 = vmul.f32 %v1664_v23, %v1664_v23 }
  0xa2   :  { %v1687_v29 = vsub.f32 %v1431_v32, %v235_v2  ;;  %v341_v52 = vmul.f32 %v1684_v13, %v1684_v13 }
  0xa3   :  { %v339_v28 = vmul.f32 %v1670_v34, %v1670_v34  ;;  %v340_v12 = vmul.f32 %v1673_v18, %v1673_v18  ;;  %v418_v30 = vadd.f32 %v344_v27, %v343_v19 }
  0xa4   :  { %v166_v33 = vpop.xlane.xlu2 %165  ;;  %v342_v2 = vmul.f32 %v1687_v29, %v1687_v29 }
  0xa5   :  { %v412_v43 = vadd.f32 %v340_v12, %v339_v28  ;;  %v239_v25 = vmul.f32 %v1559_v53, %v166_v33  ;;  %v163_v44 = vpop.xlane.xlu1 %162 }
  0xa6   :  { %v160_v5 = vpop.xlane.xlu0 %159  ;;  %419 = vadd.xlane.f32.xlu1 %v418_v30  ;;  %v238_v22 = vmul.f32 %v1559_v53, %v163_v44  ;;  %v415_v30 = vadd.f32 %v342_v2, %v341_v52 }
  0xa7   :  { %v237_v6 = vmul.f32 %v1559_v53, %v160_v5  ;;  %413 = vadd.xlane.f32.xlu2 %v412_v43  ;;  %v1693_v31 = vsub.f32 %v1439_v36, %v239_v25  ;;  %v1696_v32 = vsub.f32 %v1441_v37, %v239_v25  ;;  %407 = vadd.xlane.f32.xlu0 %v406_v21 }
  0xa8   :  { %v1713_v27 = vsub.f32 %v1447_v40, %v238_v22 }
  0xa9   :  { %v1703_v62 = vsub.f32 %v1443_v38, %v237_v6  ;;  %v1706_v19 = vsub.f32 %v1445_v39, %v237_v6  ;;  %v349_v36 = vmul.f32 %v1693_v31, %v1693_v31  ;;  %v350_v37 = vmul.f32 %v1696_v32, %v1696_v32 }
  0xaa   :  { %v1720_v38 = vsub.f32 %v1449_v41, %v238_v22  ;;  %v347_v44 = vmul.f32 %v1713_v27, %v1713_v27 }
  0xab   :  { %v345_v28 = vmul.f32 %v1703_v62, %v1703_v62  ;;  %v346_v12 = vmul.f32 %v1706_v19, %v1706_v19  ;;  %v427_v39 = vadd.f32 %v350_v37, %v349_v36 }
  0xac   :  { %2566 = vst [vmem:[#allocation31_spill] sm:$0xff] %v1720_v38  ;;  %v175_v21 = vpop.xlane.xlu2 %174  ;;  %v348_v52 = vmul.f32 %v1720_v38, %v1720_v38 }
  0xad   :  { %v421_v33 = vadd.f32 %v346_v12, %v345_v28  ;;  %v242_v43 = vmul.f32 %v1559_v53, %v175_v21  ;;  %v172_v5 = vpop.xlane.xlu1 %171 }
  0xae   :  { %v169_v25 = vpop.xlane.xlu0 %168  ;;  %428 = vadd.xlane.f32.xlu1 %v427_v39  ;;  %v241_v22 = vmul.f32 %v1559_v53, %v172_v5  ;;  %v424_v39 = vadd.f32 %v348_v52, %v347_v44 }
  0xaf   :  { %v240_v40 = vmul.f32 %v1559_v53, %v169_v25  ;;  %422 = vadd.xlane.f32.xlu2 %v421_v33  ;;  %v1727_v6 = vsub.f32 %v1457_v45, %v242_v43  ;;  %v1730_v41 = vsub.f32 %v1459_v46, %v242_v43  ;;  %416 = vadd.xlane.f32.xlu0 %v415_v30 }
  0xb0   :  { %v1750_v12 = vsub.f32 %v1465_v49, %v241_v22 }
  0xb1   :  { %v1736_v2 = vsub.f32 %v1461_v47, %v240_v40  ;;  %v1739_v36 = vsub.f32 %v1463_v48, %v240_v40  ;;  %v355_v37 = vmul.f32 %v1727_v6, %v1727_v6  ;;  %v356_v45 = vmul.f32 %v1730_v41, %v1730_v41 }
  0xb2   :  { %2567 = vst [vmem:[#allocation32_spill] sm:$0xff] %v1750_v12  ;;  %v1753_v47 = vsub.f32 %v1467_v50, %v241_v22  ;;  %v353_v44 = vmul.f32 %v1750_v12, %v1750_v12  ;;  %v2612_v12 = vld [vmem:[#allocation27_spill] sm:$0xff] }
  0xb3   :  { %v351_v46 = vmul.f32 %v1736_v2, %v1736_v2  ;;  %v352_v28 = vmul.f32 %v1739_v36, %v1739_v36  ;;  %v436_v48 = vadd.f32 %v356_v45, %v355_v37 }
  0xb4   :  { %2568 = vst [vmem:[#allocation33_spill] sm:$0xff] %v1753_v47  ;;  %v184_v30 = vpop.xlane.xlu2 %183  ;;  %v354_v22 = vmul.f32 %v1753_v47, %v1753_v47 }
  0xb5   :  { %v430_v21 = vadd.f32 %v352_v28, %v351_v46  ;;  %v245_v33 = vmul.f32 %v1559_v53, %v184_v30  ;;  %v181_v25 = vpop.xlane.xlu1 %180 }
  0xb6   :  { %v178_v43 = vpop.xlane.xlu0 %177  ;;  %437 = vadd.xlane.f32.xlu1 %v436_v48  ;;  %v244_v40 = vmul.f32 %v1559_v53, %v181_v25  ;;  %v433_v48 = vadd.f32 %v354_v22, %v353_v44 }
  0xb7   :  { %v243_v5 = vmul.f32 %v1559_v53, %v178_v43  ;;  %431 = vadd.xlane.f32.xlu2 %v430_v21  ;;  %v1759_v49 = vsub.f32 %v1475_v54, %v245_v33  ;;  %v1762_v50 = vsub.f32 %v1477_v55, %v245_v33  ;;  %425 = vadd.xlane.f32.xlu0 %v424_v39 }
  0xb8   :  { %v1779_v45 = vsub.f32 %v1483_v58, %v244_v40 }
  0xb9   :  { %2569 = vst [vmem:[#allocation34_spill] sm:$0xff] %v1759_v49  ;;  %v1769_v52 = vsub.f32 %v1479_v56, %v243_v5  ;;  %v1772_v37 = vsub.f32 %v1481_v57, %v243_v5  ;;  %v361_v54 = vmul.f32 %v1759_v49, %v1759_v49  ;;  %v362_v55 = vmul.f32 %v1762_v50, %v1762_v50 }
  0xba   :  { %2570 = vst [vmem:[#allocation35_spill] sm:$0xff] %v1762_v50  ;;  %v1786_v56 = vsub.f32 %v1485_v59, %v244_v40  ;;  %v359_v25 = vmul.f32 %v1779_v45, %v1779_v45 }
  0xbb   :  { %2571 = vst [vmem:[#allocation36_spill] sm:$0xff] %v1769_v52  ;;  %v357_v46 = vmul.f32 %v1769_v52, %v1769_v52  ;;  %v358_v28 = vmul.f32 %v1772_v37, %v1772_v37  ;;  %v445_v57 = vadd.f32 %v362_v55, %v361_v54  ;;  %v2613_v52 = vld [vmem:[#allocation28_spill] sm:$0xff] }
  0xbc   :  { %2572 = vst [vmem:[#allocation37_spill] sm:$0xff] %v1772_v37  ;;  %v193_v39 = vpop.xlane.xlu2 %192  ;;  %v360_v44 = vmul.f32 %v1786_v56, %v1786_v56 }
  0xbd   :  { %2573 = vst [vmem:[#allocation38_spill] sm:$0xff] %v1779_v45  ;;  %v439_v30 = vadd.f32 %v358_v28, %v357_v46  ;;  %v248_v21 = vmul.f32 %v1559_v53, %v193_v39  ;;  %v190_v43 = vpop.xlane.xlu1 %189  ;;  %v2583_v45 = vld [vmem:[#allocation13_spill] sm:$0xff] }
  0xbe   :  { %2574 = vst [vmem:[#allocation39_spill] sm:$0xff] %v1786_v56  ;;  %v187_v33 = vpop.xlane.xlu0 %186  ;;  %446 = vadd.xlane.f32.xlu1 %v445_v57  ;;  %v247_v40 = vmul.f32 %v1559_v53, %v190_v43  ;;  %v442_v57 = vadd.f32 %v360_v44, %v359_v25  ;;  %v2581_v56 = vld [vmem:[#allocation12_spill] sm:$0xff]  ;;  %v2585_v44 = vld [vmem:[#allocation14_spill] sm:$0xff] }
  0xbf   :  { %v246_v58 = vmul.f32 %v1559_v53, %v187_v33  ;;  %440 = vadd.xlane.f32.xlu2 %v439_v30  ;;  %v1793_v5 = vsub.f32 %v1493_v63, %v248_v21  ;;  %v1796_v59 = vsub.f32 %v1495_v3, %v248_v21  ;;  %434 = vadd.xlane.f32.xlu0 %v433_v48 }
  0xc0   :  { %v1816_v28 = vsub.f32 %v1501_v15, %v247_v40 }
  0xc1   :  { %2575 = vst [vmem:[#allocation40_spill] sm:$0xff] %v1793_v5  ;;  %v1802_v22 = vsub.f32 %v1497_v7, %v246_v58  ;;  %v1805_v54 = vsub.f32 %v1499_v8, %v246_v58  ;;  %v367_v55 = vmul.f32 %v1793_v5, %v1793_v5  ;;  %v368_v63 = vmul.f32 %v1796_v59, %v1796_v59  ;;  %v2611_v5 = vld [vmem:[#allocation26_spill] sm:$0xff] }
  0xc2   :  { %2576 = vst [vmem:[#allocation41_spill] sm:$0xff] %v1796_v59  ;;  %v1819_v7 = vsub.f32 %v1503_v16, %v247_v40  ;;  %v365_v25 = vmul.f32 %v1816_v28, %v1816_v28 }
  0xc3   :  { %2577 = vst [vmem:[#allocation42_spill] sm:$0xff] %v1802_v22  ;;  %v363_v3 = vmul.f32 %v1802_v22, %v1802_v22  ;;  %v364_v46 = vmul.f32 %v1805_v54, %v1805_v54  ;;  %v454_v8 = vadd.f32 %v368_v63, %v367_v55  ;;  %v2587_v63 = vld [vmem:[#allocation15_spill] sm:$0xff] }
  0xc4   :  { %2578 = vst [vmem:[#allocation43_spill] sm:$0xff] %v1805_v54  ;;  %v202_v48 = vpop.xlane.xlu2 %201  ;;  %v366_v40 = vmul.f32 %v1819_v7, %v1819_v7 }
  0xc5   :  { %2579 = vst [vmem:[#allocation44_spill] sm:$0xff] %v1816_v28  ;;  %v448_v39 = vadd.f32 %v364_v46, %v363_v3  ;;  %v251_v30 = vmul.f32 %v1559_v53, %v202_v48  ;;  %v199_v33 = vpop.xlane.xlu1 %198  ;;  %v2589_v46 = vld [vmem:[#allocation16_spill] sm:$0xff] }
  0xc6   :  { %2580 = vst [vmem:[#allocation45_spill] sm:$0xff] %v1819_v7  ;;  %v196_v21 = vpop.xlane.xlu0 %195  ;;  %455 = vadd.xlane.f32.xlu1 %v454_v8  ;;  %v250_v58 = vmul.f32 %v1559_v53, %v199_v33  ;;  %v451_v33 = vadd.f32 %v366_v40, %v365_v25 }
  0xc7   :  { %v249_v43 = vmul.f32 %v1559_v53, %v196_v21  ;;  %449 = vadd.xlane.f32.xlu2 %v448_v39  ;;  %v1825_v15 = vsub.f32 %v2581_v56, %v251_v30  ;;  %v1828_v16 = vsub.f32 %v2583_v45, %v251_v30  ;;  %443 = vadd.xlane.f32.xlu0 %v442_v57  ;;  %v2591_v39 = vld [vmem:[#allocation17_spill] sm:$0xff] }
  0xc8   :  { %v1845_v8 = vsub.f32 %v2589_v46, %v250_v58  ;;  %v1852_v30 = vsub.f32 %v2591_v39, %v250_v58  ;;  %v2595_v58 = vld [vmem:[#allocation19_spill] sm:$0xff] }
  0xc9   :  { %2582 = vst [vmem:[#allocation12_spill] sm:$0xff] %v1825_v15  ;;  %v1835_v55 = vsub.f32 %v2585_v44, %v249_v43  ;;  %v1838_v3 = vsub.f32 %v2587_v63, %v249_v43  ;;  %v373_v56 = vmul.f32 %v1825_v15, %v1825_v15  ;;  %v374_v45 = vmul.f32 %v1828_v16, %v1828_v16 }
  0xca   :  { %2584 = vst [vmem:[#allocation13_spill] sm:$0xff] %v1828_v16  ;;  %v2593_v16 = vld [vmem:[#allocation18_spill] sm:$0xff]  ;;  %v372_v40 = vmul.f32 %v1852_v30, %v1852_v30 }
  0xcb   :  { %2586 = vst [vmem:[#allocation14_spill] sm:$0xff] %v1835_v55  ;;  %v369_v57 = vmul.f32 %v1835_v55, %v1835_v55  ;;  %v370_v48 = vmul.f32 %v1838_v3, %v1838_v3  ;;  %v463_v21 = vadd.f32 %v374_v45, %v373_v56  ;;  %v371_v55 = vmul.f32 %v1845_v8, %v1845_v8  ;;  %v2597_v56 = vld [vmem:[#allocation20_spill] sm:$0xff] }
  0xcc   :  { %2588 = vst [vmem:[#allocation15_spill] sm:$0xff] %v1838_v3  ;;  %v211_v43 = vpop.xlane.xlu2 %210 }
  0xcd   :  { %2590 = vst [vmem:[#allocation16_spill] sm:$0xff] %v1845_v8  ;;  %v457_v44 = vadd.f32 %v370_v48, %v369_v57  ;;  %v254_v63 = vmul.f32 %v1559_v53, %v211_v43  ;;  %v208_v28 = vpop.xlane.xlu1 %207 }
  0xce   :  { %2592 = vst [vmem:[#allocation17_spill] sm:$0xff] %v1852_v30  ;;  %v205_v7 = vpop.xlane.xlu0 %204  ;;  %464 = vadd.xlane.f32.xlu1 %v463_v21  ;;  %v253_v25 = vmul.f32 %v1559_v53, %v208_v28 }
  0xcf   :  { %v252_v46 = vmul.f32 %v1559_v53, %v205_v7  ;;  %458 = vadd.xlane.f32.xlu2 %v457_v44  ;;  %v1859_v3 = vsub.f32 %v2593_v16, %v254_v63  ;;  %v1862_v39 = vsub.f32 %v2595_v58, %v254_v63  ;;  %452 = vadd.xlane.f32.xlu0 %v451_v33  ;;  %v2599_v7 = vld [vmem:[#allocation21_spill] sm:$0xff]  ;;  %v2601_v33 = vld [vmem:[#allocation22_spill] sm:$0xff]  ;;  %v2603_v44 = vld [vmem:[#allocation23_spill] sm:$0xff] }
  0xd0   :  { %v1882_v43 = vsub.f32 %v2601_v33, %v253_v25  ;;  %v1885_v63 = vsub.f32 %v2603_v44, %v253_v25  ;;  %v460_v58 = vadd.f32 %v372_v40, %v371_v55  ;;  %v2605_v25 = vld [vmem:[#allocation24_spill] sm:$0xff]  ;;  %v2607_v55 = vld [vmem:[#allocation25_spill] sm:$0xff] }
  0xd1   :  { %2594 = vst [vmem:[#allocation18_spill] sm:$0xff] %v1859_v3  ;;  %v1868_v45 = vsub.f32 %v2597_v56, %v252_v46  ;;  %v1871_v57 = vsub.f32 %v2599_v7, %v252_v46  ;;  %v379_v48 = vmul.f32 %v1859_v3, %v1859_v3  ;;  %v380_v16 = vmul.f32 %v1862_v39, %v1862_v39 }
  0xd2   :  { %2596 = vst [vmem:[#allocation19_spill] sm:$0xff] %v1862_v39  ;;  %v378_v33 = vmul.f32 %v1885_v63, %v1885_v63 }
  0xd3   :  { %2598 = vst [vmem:[#allocation20_spill] sm:$0xff] %v1868_v45  ;;  %v375_v21 = vmul.f32 %v1868_v45, %v1868_v45  ;;  %v376_v28 = vmul.f32 %v1871_v57, %v1871_v57  ;;  %v472_v46 = vadd.f32 %v380_v16, %v379_v48 }
  0xd4   :  { %2600 = vst [vmem:[#allocation21_spill] sm:$0xff] %v1871_v57  ;;  %v377_v57 = vmul.f32 %v1882_v43, %v1882_v43 }
  0xd5   :  { %2602 = vst [vmem:[#allocation22_spill] sm:$0xff] %v1882_v43  ;;  %v466_v56 = vadd.f32 %v376_v28, %v375_v21  ;;  %v217_v30 = vpop.xlane.xlu1 %216 }
  0xd6   :  { %2604 = vst [vmem:[#allocation23_spill] sm:$0xff] %v1885_v63  ;;  %v214_v7 = vpop.xlane.xlu0 %213  ;;  %473 = vadd.xlane.f32.xlu1 %v472_v46  ;;  %v256_v45 = vmul.f32 %v1559_v53, %v217_v30  ;;  %v469_v28 = vadd.f32 %v378_v33, %v377_v57 }
  0xd7   :  { %v255_v8 = vmul.f32 %v1559_v53, %v214_v7  ;;  %467 = vadd.xlane.f32.xlu2 %v466_v56  ;;  %461 = vadd.xlane.f32.xlu0 %v460_v58 }
  0xd8   :  { %v1904_v30 = vsub.f32 %v1551_v42, %v256_v45  ;;  %v1907_v21 = vsub.f32 %v1553_v35, %v256_v45 }
  0xd9   :  { %v1894_v44 = vsub.f32 %v2605_v25, %v255_v8  ;;  %v1897_v40 = vsub.f32 %v2607_v55, %v255_v8 }
  0xda   :  { %2609 = vst [vmem:[#allocation46_spill] sm:$0xff] %v1904_v30  ;;  %v383_v8 = vmul.f32 %v1904_v30, %v1904_v30  ;;  %v384_v58 = vmul.f32 %v1907_v21, %v1907_v21 }
  0xdb   :  { %2606 = vst [vmem:[#allocation24_spill] sm:$0xff] %v1894_v44  ;;  %v381_v48 = vmul.f32 %v1894_v44, %v1894_v44  ;;  %v382_v16 = vmul.f32 %v1897_v40, %v1897_v40 }
  0xdc   :  { %2608 = vst [vmem:[#allocation25_spill] sm:$0xff] %v1897_v40  ;;  %v478_v56 = vadd.f32 %v384_v58, %v383_v8 }
  0xdd   :  { %2610 = vst [vmem:[#allocation47_spill] sm:$0xff] %v1907_v21  ;;  %v475_v46 = vadd.f32 %v382_v16, %v381_v48  ;;  %v999_v21 = vld [vmem:[#allocation7] sm:$0x3] }
  0xde   :  { %v1933_v63 = vperm.slane %v999_v21, 1 }
  0xdf   :  { %476 = vadd.xlane.f32.xlu2 %v475_v46  ;;  %470 = vadd.xlane.f32.xlu0 %v469_v28 }
  0xe7   :  { %479 = vadd.xlane.f32.xlu0 %v478_v56 }
 0x101   :  { %v393_v7 = vpop.xlane.xlu1 %392 }
 0x102   :  { %v387_v25 = vpop.xlane.xlu2 %386  ;;  %v483_v42 = vmul.f32 %v393_v7, %v1559_v53 }
 0x103   :  { %v481_v55 = vmul.f32 %v387_v25, %v1559_v53  ;;  %v929_v25 = vld [vmem:[#allocation5] sm:$0x3] }
 0x104   :  { %v515_v35 = vadd.f32 1e-05, %v483_v42 }
 0x105   :  { %v513_v45 = vadd.f32 1e-05, %v481_v55 }
 0x106   :  { %1162 = vrsqrt.f32 %v515_v35  ;;  %vm571_vm1 = vweird.f32 %v515_v35 }
 0x107   :  { %1164 = vrsqrt.f32 %v513_v45  ;;  %vm551_vm2 = vweird.f32 %v513_v45 }
 0x109   :  { %v402_v57 = vpop.xlane.xlu1 %401 }
 0x10a   :  { %v396_v33 = vpop.xlane.xlu2 %395  ;;  %v486_v48 = vmul.f32 %v402_v57, %v1559_v53  ;;  %v390_v28 = vpop.xlane.xlu0 %389 }
 0x10b   :  { %v484_v16 = vmul.f32 %v396_v33, %v1559_v53  ;;  %v482_v46 = vmul.f32 %v390_v28, %v1559_v53  ;;  %v1926_v33 = vperm.slane %v929_v25, 0  ;;  %v1928_v28 = vperm.slane %v929_v25, 1 }
 0x10c   :  { %v1163_v8 = vpop.eup %1162  ;;  %v1918_v58 = vadd.f32 1e-05, %v486_v48 }
 0x10d   :  { %v1920_v56 = vadd.f32 1e-05, %v484_v16  ;;  %v1165_v7 = vpop.eup %1164  ;;  %v566_v42 = vmul.f32 %v1163_v8, %v515_v35  ;;  %v1922_v55 = vadd.f32 1e-05, %v482_v46  ;;  %v1931_v16 = vperm.slane %v999_v21, 0 }
 0x10e   :  { %v546_v30 = vmul.f32 %v1165_v7, %v513_v45  ;;  %1166 = vrsqrt.f32 %v1918_v58  ;;  %vm572_vm3 = vweird.f32 %v1163_v8  ;;  %vm552_vm4 = vweird.f32 %v1165_v7 }
 0x10f   :  { %v567_v57 = vmul.f32 %v1163_v8, %v566_v42  ;;  %1168 = vrsqrt.f32 %v1920_v56  ;;  %vm601_vm5 = vweird.f32 %v1918_v58  ;;  %vm581_vm6 = vweird.f32 %v1920_v56  ;;  %vm573_vm8 = vmor %vm571_vm1, %vm572_vm3 }
 0x110   :  { %v547_v48 = vmul.f32 %v1165_v7, %v546_v30  ;;  %1170 = vrsqrt.f32 %v1922_v55  ;;  %vm553_vm9 = vmor %vm551_vm2, %vm552_vm4  ;;  %vm561_vm13 = vweird.f32 %v1922_v55 }
 0x111   :  { %v568_v46 = vmul.f32 0.5, %v567_v57  ;;  %v411_v43 = vpop.xlane.xlu1 %410 }
 0x112   :  { %v405_v40 = vpop.xlane.xlu2 %404  ;;  %v548_v44 = vmul.f32 0.5, %v547_v48  ;;  %v489_v42 = vmul.f32 %v411_v43, %v1559_v53  ;;  %v399_v3 = vpop.xlane.xlu0 %398 }
 0x113   :  { %v487_v39 = vmul.f32 %v405_v40, %v1559_v53  ;;  %v569_v25 = vsub.f32 1.5, %v568_v46  ;;  %v485_v30 = vmul.f32 %v399_v3, %v1559_v53 }
 0x114   :  { %v1167_v15 = vpop.eup %1166  ;;  %v549_v54 = vsub.f32 1.5, %v548_v44  ;;  %v1940_v21 = vadd.f32 1e-05, %v489_v42 }
 0x115   :  { %v1169_v57 = vpop.eup %1168  ;;  %v570_v48 = vmul.f32 %v1163_v8, %v569_v25  ;;  %v596_v43 = vmul.f32 %v1167_v15, %v1918_v58  ;;  %vm602_vm7 = vweird.f32 %v1167_v15  ;;  %v1943_v40 = vadd.f32 1e-05, %v487_v39 }
 0x116   :  { %v1171_v46 = vpop.eup %1170  ;;  %v550_v22 = vmul.f32 %v1165_v7, %v549_v54  ;;  %v576_v3 = vmul.f32 %v1169_v57, %v1920_v56  ;;  %1172 = vrsqrt.f32 %v1940_v21  ;;  %v1948_v44 = vadd.f32 1e-05, %v485_v30  ;;  %vm603_vm12 = vmor %vm601_vm5, %vm602_vm7  ;;  %v2614_v56 = vld [vmem:[#allocation29_spill] sm:$0xff] }
 0x117   :  { %v574_v59 = vsel %vm573_vm8, %v1163_v8, %v570_v48  ;;  %v597_v42 = vmul.f32 %v1167_v15, %v596_v43  ;;  %vm582_vm10 = vweird.f32 %v1169_v57  ;;  %v556_v25 = vmul.f32 %v1171_v46, %v1922_v55 }
 0x118   :  { %v869_v39 = vmul.f32 %v574_v59, %v1564_v60  ;;  %v870_v35 = vmul.f32 %v574_v59, %v2611_v5  ;;  %v554_v47 = vsel %vm553_vm9, %v1165_v7, %v550_v22  ;;  %v577_v54 = vmul.f32 %v1169_v57, %v576_v3  ;;  %vm583_vm15 = vmor %vm581_vm6, %vm582_vm10 }
 0x119   :  { %v865_v37 = vmul.f32 %v554_v47, %v2612_v12  ;;  %v866_v50 = vmul.f32 %v554_v47, %v2613_v52  ;;  %v598_v30 = vmul.f32 0.5, %v597_v42  ;;  %v557_v49 = vmul.f32 %v1171_v46, %v556_v25  ;;  %v420_v59 = vpop.xlane.xlu1 %419 }
 0x11a   :  { %v939_v8 = vmul.f32 %v1926_v33, %v869_v39  ;;  %v940_v45 = vmul.f32 %v1928_v28, %v870_v35  ;;  %v578_v48 = vmul.f32 0.5, %v577_v54  ;;  %vm562_vm11 = vweird.f32 %v1171_v46  ;;  %v414_v58 = vpop.xlane.xlu2 %413 }
 0x11b   :  { %v935_v43 = vmul.f32 %v1926_v33, %v865_v37  ;;  %v936_v60 = vmul.f32 %v1928_v28, %v866_v50  ;;  %v599_v38 = vsub.f32 1.5, %v598_v30  ;;  %v558_v5 = vmul.f32 0.5, %v557_v49  ;;  %vm563_vm1 = vmor %vm561_vm13, %vm562_vm11 }
 0x11c   :  { %v1961_v22 = vpop.eup %1172  ;;  %v1009_v12 = vadd.f32 %v1931_v16, %v939_v8  ;;  %v1010_v47 = vadd.f32 %v1933_v63, %v940_v45  ;;  %v579_v52 = vsub.f32 1.5, %v578_v48  ;;  %1174 = vrsqrt.f32 %v1943_v40 }
 0x11d   :  { %v1005_v37 = vadd.f32 %v1931_v16, %v935_v43  ;;  %v1006_v50 = vadd.f32 %v1933_v63, %v936_v60  ;;  %v600_v7 = vmul.f32 %v1167_v15, %v599_v38  ;;  %v559_v49 = vsub.f32 1.5, %v558_v5 }
 0x11e   :  { %1073 = vst [vmem:[#allocation8 + $0x20] sm:$0xff] %v1009_v12  ;;  %v580_v3 = vmul.f32 %v1169_v57, %v579_v52  ;;  %v626_v42 = vmul.f32 %v1961_v22, %v1940_v21  ;;  %vm631_vm14 = vweird.f32 %v1940_v21  ;;  %vm632_vm0 = vweird.f32 %v1961_v22 }
 0x11f   :  { %1074 = vst [vmem:[#allocation8 + $0x28] sm:$0xff] %v1010_v47  ;;  %v604_v25 = vsel %vm603_vm12, %v1167_v15, %v600_v7  ;;  %v560_v39 = vmul.f32 %v1171_v46, %v559_v49  ;;  %1176 = vrsqrt.f32 %v1948_v44  ;;  %v492_v45 = vmul.f32 %v420_v59, %v1559_v53  ;;  %vm633_vm2 = vmor %vm631_vm14, %vm632_vm0 }
 0x120   :  { %1069 = vst [vmem:[#allocation8] sm:$0xff] %v1005_v37  ;;  %v875_v38 = vmul.f32 %v604_v25, %v1588_v24  ;;  %v876_v55 = vmul.f32 %v604_v25, %v1591_v17  ;;  %v584_v35 = vsel %vm583_vm15, %v1169_v57, %v580_v3  ;;  %v627_v54 = vmul.f32 %v1961_v22, %v626_v42  ;;  %v2615_v57 = vld [vmem:[#allocation30_spill] sm:$0xff] }
 0x121   :  { %1070 = vst [vmem:[#allocation8 + $0x8] sm:$0xff] %v1006_v50  ;;  %v871_v15 = vmul.f32 %v584_v35, %v1594_v61  ;;  %v872_v30 = vmul.f32 %v584_v35, %v2614_v56  ;;  %v564_v8 = vsel %vm563_vm1, %v1171_v46, %v560_v39  ;;  %v408_v50 = vpop.xlane.xlu0 %407  ;;  %v429_v25 = vpop.xlane.xlu1 %428  ;;  %vm611_vm3 = vweird.f32 %v1943_v40 }
 0x122   :  { %v1175_v48 = vpop.eup %1174  ;;  %v945_v43 = vmul.f32 %v1926_v33, %v875_v38  ;;  %v946_v24 = vmul.f32 %v1928_v28, %v876_v55  ;;  %v867_v17 = vmul.f32 %v564_v8, %v1600_v26  ;;  %v868_v60 = vmul.f32 %v564_v8, %v2615_v57 }
 0x123   :  { %v941_v5 = vmul.f32 %v1926_v33, %v871_v15  ;;  %v942_v12 = vmul.f32 %v1928_v28, %v872_v30  ;;  %v628_v47 = vmul.f32 0.5, %v627_v54  ;;  %v606_v61 = vmul.f32 %v1175_v48, %v1943_v40 }
 0x124   :  { %v1015_v46 = vadd.f32 %v1931_v16, %v945_v43  ;;  %v1016_v59 = vadd.f32 %v1933_v63, %v946_v24  ;;  %v937_v52 = vmul.f32 %v1926_v33, %v867_v17  ;;  %v938_v37 = vmul.f32 %v1928_v28, %v868_v60  ;;  %v423_v43 = vpop.xlane.xlu2 %422 }
 0x125   :  { %v1998_v7 = vpop.eup %1176  ;;  %v1011_v26 = vadd.f32 %v1931_v16, %v941_v5  ;;  %v1012_v49 = vadd.f32 %v1933_v63, %v942_v12  ;;  %v629_v3 = vsub.f32 1.5, %v628_v47  ;;  %v607_v42 = vmul.f32 %v1175_v48, %v606_v61 }
 0x126   :  { %1079 = vst [vmem:[#allocation8 + $0x50] sm:$0xff] %v1015_v46  ;;  %v1007_v39 = vadd.f32 %v1931_v16, %v937_v52  ;;  %v586_v38 = vmul.f32 %v1998_v7, %v1948_v44  ;;  %v1008_v55 = vadd.f32 %v1933_v63, %v938_v37  ;;  %v2012_v15 = vadd.f32 1e-05, %v492_v45 }
 0x127   :  { %1080 = vst [vmem:[#allocation8 + $0x58] sm:$0xff] %v1016_v59  ;;  %v630_v35 = vmul.f32 %v1961_v22, %v629_v3  ;;  %v608_v54 = vmul.f32 0.5, %v607_v42  ;;  %v490_v30 = vmul.f32 %v414_v58, %v1559_v53  ;;  %v488_v21 = vmul.f32 %v408_v50, %v1559_v53 }
 0x128   :  { %1075 = vst [vmem:[#allocation8 + $0x30] sm:$0xff] %v1011_v26  ;;  %v587_v56 = vmul.f32 %v1998_v7, %v586_v38  ;;  %v495_v8 = vmul.f32 %v429_v25, %v1559_v53  ;;  %vm612_vm4 = vweird.f32 %v1175_v48  ;;  %1178 = vrsqrt.f32 %v2012_v15 }
 0x129   :  { %1076 = vst [vmem:[#allocation8 + $0x38] sm:$0xff] %v1012_v49  ;;  %v634_v24 = vsel %vm633_vm2, %v1961_v22, %v630_v35  ;;  %v609_v17 = vsub.f32 1.5, %v608_v54  ;;  %v2022_v5 = vadd.f32 1e-05, %v490_v30  ;;  %v2024_v12 = vadd.f32 1e-05, %v488_v21  ;;  %vm613_vm5 = vmor %vm611_vm3, %vm612_vm4  ;;  %v417_v26 = vpop.xlane.xlu0 %416 }
 0x12a   :  { %1071 = vst [vmem:[#allocation8 + $0x10] sm:$0xff] %v1007_v39  ;;  %v881_v45 = vmul.f32 %v634_v24, %v1627_v0  ;;  %v882_v57 = vmul.f32 %v634_v24, %v1630_v1  ;;  %v588_v60 = vmul.f32 0.5, %v587_v56  ;;  %v2026_v47 = vadd.f32 1e-05, %v495_v8 }
 0x12b   :  { %1072 = vst [vmem:[#allocation8 + $0x18] sm:$0xff] %v1008_v55  ;;  %v610_v58 = vmul.f32 %v1175_v48, %v609_v17  ;;  %v493_v22 = vmul.f32 %v423_v43, %v1559_v53  ;;  %1180 = vrsqrt.f32 %v2022_v5  ;;  %vm592_vm6 = vweird.f32 %v1998_v7 }
 0x12c   :  { %v951_v61 = vmul.f32 %v1926_v33, %v881_v45  ;;  %v952_v46 = vmul.f32 %v1928_v28, %v882_v57  ;;  %v589_v0 = vsub.f32 1.5, %v588_v60  ;;  %1182 = vrsqrt.f32 %v2024_v12 }
 0x12d   :  { %v614_v1 = vsel %vm613_vm5, %v1175_v48, %v610_v58  ;;  %vm591_vm7 = vweird.f32 %v1948_v44  ;;  %1184 = vrsqrt.f32 %v2026_v47  ;;  %v2045_v48 = vadd.f32 1e-05, %v493_v22  ;;  %v432_v22 = vpop.xlane.xlu2 %431 }
 0x12e   :  { %v1021_v59 = vadd.f32 %v1931_v16, %v951_v61  ;;  %v1022_v52 = vadd.f32 %v1933_v63, %v952_v46  ;;  %v877_v37 = vmul.f32 %v614_v1, %v1637_v9  ;;  %v878_v50 = vmul.f32 %v614_v1, %v1640_v10  ;;  %v2040_v49 = vpop.eup %1178  ;;  %vm593_vm8 = vmor %vm591_vm7, %vm592_vm6 }
 0x12f   :  { %v590_v40 = vmul.f32 %v1998_v7, %v589_v0  ;;  %v656_v9 = vmul.f32 %v2040_v49, %v2012_v15  ;;  %vm661_vm9 = vweird.f32 %v2012_v15  ;;  %vm641_vm10 = vweird.f32 %v2022_v5 }
 0x130   :  { %1085 = vst [vmem:[#allocation8 + $0x80] sm:$0xff] %v1021_v59  ;;  %v947_v3 = vmul.f32 %v1926_v33, %v877_v37  ;;  %v948_v42 = vmul.f32 %v1928_v28, %v878_v50  ;;  %1186 = vrsqrt.f32 %v2045_v48  ;;  %v491_v44 = vmul.f32 %v417_v26, %v1559_v53 }
 0x131   :  { %1086 = vst [vmem:[#allocation8 + $0x88] sm:$0xff] %v1022_v52  ;;  %v594_v10 = vsel %vm593_vm8, %v1998_v7, %v590_v40  ;;  %v1181_v25 = vpop.eup %1180  ;;  %v657_v56 = vmul.f32 %v2040_v49, %v656_v9  ;;  %vm691_vm11 = vweird.f32 %v2026_v47  ;;  %vm662_vm12 = vweird.f32 %v2040_v49  ;;  %v426_v26 = vpop.xlane.xlu0 %425 }
 0x132   :  { %v1017_v39 = vadd.f32 %v1931_v16, %v947_v3  ;;  %v1018_v38 = vadd.f32 %v1933_v63, %v948_v42  ;;  %v873_v55 = vmul.f32 %v594_v10, %v1618_v14  ;;  %v874_v35 = vmul.f32 %v594_v10, %v1621_v4  ;;  %v2062_v54 = vpop.eup %1182  ;;  %v438_v4 = vpop.xlane.xlu1 %437  ;;  %vm2092_vm1 = vmor %vm661_vm9, %vm662_vm12 }
 0x133   :  { %v636_v7 = vmul.f32 %v1181_v25, %v2022_v5  ;;  %v2067_v30 = vadd.f32 1e-05, %v491_v44  ;;  %v616_v14 = vmul.f32 %v2062_v54, %v2024_v12  ;;  %vm621_vm13 = vweird.f32 %v2024_v12  ;;  %v2075_v43 = vpop.eup %1184 }
 0x134   :  { %1081 = vst [vmem:[#allocation8 + $0x60] sm:$0xff] %v1017_v39  ;;  %v943_v21 = vmul.f32 %v1926_v33, %v873_v55  ;;  %v944_v8 = vmul.f32 %v1928_v28, %v874_v35  ;;  %v658_v24 = vmul.f32 0.5, %v657_v56  ;;  %vm642_vm14 = vweird.f32 %v1181_v25 }
 0x135   :  { %1082 = vst [vmem:[#allocation8 + $0x68] sm:$0xff] %v1018_v38  ;;  %v637_v17 = vmul.f32 %v1181_v25, %v636_v7  ;;  %1188 = vrsqrt.f32 %v2067_v30  ;;  %v617_v60 = vmul.f32 %v2062_v54, %v616_v14  ;;  %v686_v58 = vmul.f32 %v2075_v43, %v2026_v47  ;;  %vm643_vm4 = vmor %vm641_vm10, %vm642_vm14  ;;  %v441_v47 = vpop.xlane.xlu2 %440 }
 0x136   :  { %v1013_v45 = vadd.f32 %v1931_v16, %v943_v21  ;;  %v1014_v57 = vadd.f32 %v1933_v63, %v944_v8  ;;  %v2083_v61 = vpop.eup %1186  ;;  %v659_v46 = vsub.f32 1.5, %v658_v24  ;;  %vm622_vm15 = vweird.f32 %v2062_v54 }
 0x137   :  { %v638_v0 = vmul.f32 0.5, %v637_v17  ;;  %vm671_vm0 = vweird.f32 %v2045_v48  ;;  %v498_v1 = vmul.f32 %v438_v4, %v1559_v53  ;;  %v618_v52 = vmul.f32 0.5, %v617_v60  ;;  %vm623_vm5 = vmor %vm621_vm13, %vm622_vm15 }
 0x138   :  { %1077 = vst [vmem:[#allocation8 + $0x40] sm:$0xff] %v1013_v45  ;;  %v687_v37 = vmul.f32 %v2075_v43, %v686_v58  ;;  %vm692_vm2 = vweird.f32 %v2075_v43  ;;  %v666_v50 = vmul.f32 %v2083_v61, %v2045_v48  ;;  %v660_v40 = vmul.f32 %v2040_v49, %v659_v46 }
 0x139   :  { %1078 = vst [vmem:[#allocation8 + $0x48] sm:$0xff] %v1014_v57  ;;  %v639_v3 = vsub.f32 1.5, %v638_v0  ;;  %vm672_vm3 = vweird.f32 %v2083_v61  ;;  %v2102_v15 = vadd.f32 1e-05, %v498_v1  ;;  %v619_v42 = vsub.f32 1.5, %v618_v52  ;;  %vm693_vm7 = vmor %vm691_vm11, %vm692_vm2 }
 0x13a   :  { %v688_v9 = vmul.f32 0.5, %v687_v37  ;;  %v667_v10 = vmul.f32 %v2083_v61, %v666_v50  ;;  %v2106_v44 = vmul.f32 %v432_v22, %v1559_v53  ;;  %v664_v38 = vsel %vm2092_vm1, %v2040_v49, %v660_v40  ;;  %v447_v12 = vpop.xlane.xlu1 %446  ;;  %vm673_vm9 = vmor %vm671_vm0, %vm672_vm3 }
 0x13b   :  { %v2108_v39 = vpop.eup %1188  ;;  %v640_v55 = vmul.f32 %v1181_v25, %v639_v3  ;;  %1190 = vrsqrt.f32 %v2102_v15  ;;  %v2115_v35 = vmul.f32 %v426_v26, %v1559_v53  ;;  %v887_v56 = vmul.f32 %v664_v38, %v1661_v51 }
 0x13c   :  { %v888_v7 = vmul.f32 %v664_v38, %v1664_v23  ;;  %v620_v21 = vmul.f32 %v2062_v54, %v619_v42  ;;  %v689_v8 = vsub.f32 1.5, %v688_v9  ;;  %v668_v49 = vmul.f32 0.5, %v667_v10 }
 0x13d   :  { %v644_v14 = vsel %vm643_vm4, %v1181_v25, %v640_v55  ;;  %v646_v4 = vmul.f32 %v2108_v39, %v2067_v30  ;;  %vm652_vm6 = vweird.f32 %v2108_v39  ;;  %v957_v51 = vmul.f32 %v1926_v33, %v887_v56 }
 0x13e   :  { %v958_v23 = vmul.f32 %v1928_v28, %v888_v7  ;;  %v883_v5 = vmul.f32 %v644_v14, %v1670_v34  ;;  %v884_v24 = vmul.f32 %v644_v14, %v1673_v18  ;;  %v624_v25 = vsel %vm623_vm5, %v2062_v54, %v620_v21 }
 0x13f   :  { %v690_v17 = vmul.f32 %v2075_v43, %v689_v8  ;;  %v669_v45 = vsub.f32 1.5, %v668_v49  ;;  %v647_v57 = vmul.f32 %v2108_v39, %v646_v4  ;;  %vm651_vm8 = vweird.f32 %v2067_v30  ;;  %v435_v4 = vpop.xlane.xlu0 %434 }
 0x140   :  { %v1027_v60 = vadd.f32 %v1931_v16, %v957_v51  ;;  %v1028_v34 = vadd.f32 %v1933_v63, %v958_v23  ;;  %v953_v18 = vmul.f32 %v1926_v33, %v883_v5  ;;  %v954_v58 = vmul.f32 %v1928_v28, %v884_v24  ;;  %vm653_vm11 = vmor %vm651_vm8, %vm652_vm6 }
 0x141   :  { %v2146_v22 = vpop.eup %1190  ;;  %v879_v54 = vmul.f32 %v624_v25, %v1647_v11  ;;  %v880_v46 = vmul.f32 %v624_v25, %v1654_v20  ;;  %v694_v0 = vsel %vm693_vm7, %v2075_v43, %v690_v17  ;;  %v670_v1 = vmul.f32 %v2083_v61, %v669_v45 }
 0x142   :  { %1091 = vst [vmem:[#allocation8 + $0xb0] sm:$0xff] %v1027_v60  ;;  %v1023_v59 = vadd.f32 %v1931_v16, %v953_v18  ;;  %v1024_v52 = vadd.f32 %v1933_v63, %v954_v58  ;;  %v893_v37 = vmul.f32 %v694_v0, %v1693_v31  ;;  %v894_v50 = vmul.f32 %v694_v0, %v1696_v32  ;;  %v456_v51 = vpop.xlane.xlu1 %455 }
 0x143   :  { %1092 = vst [vmem:[#allocation8 + $0xb8] sm:$0xff] %v1028_v34  ;;  %v949_v11 = vmul.f32 %v1926_v33, %v879_v54  ;;  %v950_v20 = vmul.f32 %v1928_v28, %v880_v46  ;;  %v674_v43 = vsel %vm673_vm9, %v2083_v61, %v670_v1  ;;  %v648_v26 = vmul.f32 0.5, %v647_v57 }
 0x144   :  { %1087 = vst [vmem:[#allocation8 + $0x90] sm:$0xff] %v1023_v59  ;;  %v963_v40 = vmul.f32 %v1926_v33, %v893_v37  ;;  %v964_v31 = vmul.f32 %v1928_v28, %v894_v50  ;;  %v889_v32 = vmul.f32 %v674_v43, %v1703_v62  ;;  %v890_v3 = vmul.f32 %v674_v43, %v1706_v19 }
 0x145   :  { %1088 = vst [vmem:[#allocation8 + $0x98] sm:$0xff] %v1024_v52  ;;  %v1019_v48 = vadd.f32 %v1931_v16, %v949_v11  ;;  %v1020_v42 = vadd.f32 %v1933_v63, %v950_v20  ;;  %v649_v9 = vsub.f32 1.5, %v648_v26  ;;  %v716_v10 = vmul.f32 %v2146_v22, %v2102_v15 }
 0x146   :  { %v1033_v61 = vadd.f32 %v1931_v16, %v963_v40  ;;  %v1034_v38 = vadd.f32 %v1933_v63, %v964_v31  ;;  %v959_v55 = vmul.f32 %v1926_v33, %v889_v32  ;;  %v960_v56 = vmul.f32 %v1928_v28, %v890_v3 }
 0x147   :  { %1083 = vst [vmem:[#allocation8 + $0x70] sm:$0xff] %v1019_v48  ;;  %v650_v62 = vmul.f32 %v2108_v39, %v649_v9  ;;  %v717_v19 = vmul.f32 %v2146_v22, %v716_v10  ;;  %vm721_vm10 = vweird.f32 %v2102_v15  ;;  %v2179_v7 = vadd.f32 1e-05, %v2106_v44 }
 0x148   :  { %1084 = vst [vmem:[#allocation8 + $0x78] sm:$0xff] %v1020_v42  ;;  %v1029_v21 = vadd.f32 %v1931_v16, %v959_v55  ;;  %v1030_v8 = vadd.f32 %v1933_v63, %v960_v56  ;;  %v2188_v14 = vadd.f32 1e-05, %v2115_v35  ;;  %v501_v49 = vmul.f32 %v447_v12, %v1559_v53  ;;  %v450_v35 = vpop.xlane.xlu2 %449 }
 0x149   :  { %1097 = vst [vmem:[#allocation8 + $0xe0] sm:$0xff] %v1033_v61  ;;  %v654_v44 = vsel %vm653_vm11, %v2108_v39, %v650_v62  ;;  %v718_v23 = vmul.f32 0.5, %v717_v19  ;;  %vm722_vm12 = vweird.f32 %v2146_v22  ;;  %1192 = vrsqrt.f32 %v2179_v7 }
 0x14a   :  { %1098 = vst [vmem:[#allocation8 + $0xe8] sm:$0xff] %v1034_v38  ;;  %v885_v5 = vmul.f32 %v654_v44, %v1684_v13  ;;  %v886_v30 = vmul.f32 %v654_v44, %v1687_v29  ;;  %1194 = vrsqrt.f32 %v2188_v14  ;;  %v2197_v12 = vadd.f32 1e-05, %v501_v49  ;;  %vm723_vm13 = vmor %vm721_vm10, %vm722_vm12  ;;  %v465_v11 = vpop.xlane.xlu1 %464 }
 0x14b   :  { %1093 = vst [vmem:[#allocation8 + $0xc0] sm:$0xff] %v1029_v21  ;;  %v719_v24 = vsub.f32 1.5, %v718_v23  ;;  %v499_v25 = vmul.f32 %v441_v47, %v1559_v53  ;;  %v497_v39 = vmul.f32 %v435_v4, %v1559_v53  ;;  %v504_v13 = vmul.f32 %v456_v51, %v1559_v53 }
 0x14c   :  { %1094 = vst [vmem:[#allocation8 + $0xc8] sm:$0xff] %v1030_v8  ;;  %v955_v17 = vmul.f32 %v1926_v33, %v885_v5  ;;  %v956_v45 = vmul.f32 %v1928_v28, %v886_v30  ;;  %1196 = vrsqrt.f32 %v2197_v12  ;;  %v502_v60 = vmul.f32 %v450_v35, %v1559_v53 }
 0x14d   :  { %v720_v29 = vmul.f32 %v2146_v22, %v719_v24  ;;  %v2210_v57 = vadd.f32 1e-05, %v499_v25  ;;  %v2215_v58 = vadd.f32 1e-05, %v497_v39  ;;  %v2217_v47 = vadd.f32 1e-05, %v504_v13 }
 0x14e   :  { %v1025_v34 = vadd.f32 %v1931_v16, %v955_v17  ;;  %v1026_v18 = vadd.f32 %v1933_v63, %v956_v45  ;;  %vm701_vm14 = vweird.f32 %v2179_v7  ;;  %vm681_vm15 = vweird.f32 %v2188_v14  ;;  %v2618_v13 = vld [vmem:[#allocation31_spill] sm:$0xff] }
 0x14f   :  { %v1193_v15 = vpop.eup %1192  ;;  %v724_v54 = vsel %vm723_vm13, %v2146_v22, %v720_v29  ;;  %1198 = vrsqrt.f32 %v2210_v57  ;;  %v2231_v22 = vadd.f32 1e-05, %v502_v60  ;;  %vm751_vm2 = vweird.f32 %v2197_v12 }
 0x150   :  { %v2221_v46 = vpop.eup %1194  ;;  %1089 = vst [vmem:[#allocation8 + $0xa0] sm:$0xff] %v1025_v34  ;;  %v899_v0 = vmul.f32 %v724_v54, %v1727_v6  ;;  %v900_v1 = vmul.f32 %v724_v54, %v1730_v41  ;;  %v696_v59 = vmul.f32 %v1193_v15, %v2179_v7  ;;  %1200 = vrsqrt.f32 %v2215_v58  ;;  %v444_v41 = vpop.xlane.xlu0 %443 }
 0x151   :  { %1090 = vst [vmem:[#allocation8 + $0xa8] sm:$0xff] %v1026_v18  ;;  %v676_v52 = vmul.f32 %v2221_v46, %v2188_v14  ;;  %1202 = vrsqrt.f32 %v2217_v47  ;;  %vm702_vm0 = vweird.f32 %v1193_v15  ;;  %vm682_vm1 = vweird.f32 %v2221_v46  ;;  %v459_v54 = vpop.xlane.xlu2 %458 }
 0x152   :  { %v969_v37 = vmul.f32 %v1926_v33, %v899_v0  ;;  %v970_v6 = vmul.f32 %v1928_v28, %v900_v1  ;;  %v697_v50 = vmul.f32 %v1193_v15, %v696_v59  ;;  %v1197_v20 = vpop.eup %1196  ;;  %vm731_vm3 = vweird.f32 %v2210_v57  ;;  %vm703_vm7 = vmor %vm701_vm14, %vm702_vm0 }
 0x153   :  { %v677_v43 = vmul.f32 %v2221_v46, %v676_v52  ;;  %v746_v32 = vmul.f32 %v1197_v20, %v2197_v12  ;;  %1204 = vrsqrt.f32 %v2231_v22  ;;  %v500_v42 = vmul.f32 %v444_v41, %v1559_v53  ;;  %vm683_vm11 = vmor %vm681_vm15, %vm682_vm1 }
 0x154   :  { %v1039_v26 = vadd.f32 %v1931_v16, %v969_v37  ;;  %v1040_v40 = vadd.f32 %v1933_v63, %v970_v6  ;;  %v698_v31 = vmul.f32 0.5, %v697_v50  ;;  %v507_v9 = vmul.f32 %v465_v11, %v1559_v53  ;;  %v2619_v37 = vld [vmem:[#allocation34_spill] sm:$0xff]  ;;  %v2620_v50 = vld [vmem:[#allocation35_spill] sm:$0xff] }
 0x155   :  { %v1199_v3 = vpop.eup %1198  ;;  %v678_v48 = vmul.f32 0.5, %v677_v43  ;;  %v747_v61 = vmul.f32 %v1197_v20, %v746_v32  ;;  %vm752_vm4 = vweird.f32 %v1197_v20  ;;  %v2249_v62 = vadd.f32 1e-05, %v500_v42  ;;  %v2621_v32 = vld [vmem:[#allocation36_spill] sm:$0xff]  ;;  %v2622_v42 = vld [vmem:[#allocation37_spill] sm:$0xff] }
 0x156   :  { %1103 = vst [vmem:[#allocation8 + $0x110] sm:$0xff] %v1039_v26  ;;  %v699_v10 = vsub.f32 1.5, %v698_v31  ;;  %v726_v38 = vmul.f32 %v1199_v3, %v2210_v57  ;;  %v2247_v55 = vpop.eup %1200  ;;  %vm732_vm5 = vweird.f32 %v1199_v3  ;;  %v2251_v19 = vadd.f32 1e-05, %v507_v9  ;;  %vm753_vm12 = vmor %vm751_vm2, %vm752_vm4 }
 0x157   :  { %1104 = vst [vmem:[#allocation8 + $0x118] sm:$0xff] %v1040_v40  ;;  %v679_v56 = vsub.f32 1.5, %v678_v48  ;;  %v2253_v21 = vpop.eup %1202  ;;  %v748_v49 = vmul.f32 0.5, %v747_v61  ;;  %v706_v51 = vmul.f32 %v2247_v55, %v2215_v58  ;;  %vm781_vm6 = vweird.f32 %v2217_v47  ;;  %vm733_vm13 = vmor %vm731_vm3, %vm732_vm5 }
 0x158   :  { %v700_v8 = vmul.f32 %v1193_v15, %v699_v10  ;;  %v727_v4 = vmul.f32 %v1199_v3, %v726_v38  ;;  %vm711_vm8 = vweird.f32 %v2215_v58  ;;  %vm712_vm9 = vweird.f32 %v2247_v55  ;;  %v453_v59 = vpop.xlane.xlu0 %452 }
 0x159   :  { %v680_v44 = vmul.f32 %v2221_v46, %v679_v56  ;;  %v776_v23 = vmul.f32 %v2253_v21, %v2217_v47  ;;  %vm782_vm10 = vweird.f32 %v2253_v21  ;;  %v749_v30 = vsub.f32 1.5, %v748_v49  ;;  %v2272_v24 = vpop.eup %1204  ;;  %vm713_vm14 = vmor %vm711_vm8, %vm712_vm9 }
 0x15a   :  { %v704_v5 = vsel %vm703_vm7, %v1193_v15, %v700_v8  ;;  %v728_v7 = vmul.f32 0.5, %v727_v4  ;;  %v707_v35 = vmul.f32 %v2247_v55, %v706_v51  ;;  %v505_v61 = vmul.f32 %v459_v54, %v1559_v53  ;;  %vm783_vm15 = vmor %vm781_vm6, %vm782_vm10 }
 0x15b   :  { %v895_v25 = vmul.f32 %v704_v5, %v1736_v2  ;;  %v896_v39 = vmul.f32 %v704_v5, %v1739_v36  ;;  %v684_v17 = vsel %vm683_vm11, %v2221_v46, %v680_v44  ;;  %v777_v45 = vmul.f32 %v2253_v21, %v776_v23  ;;  %v2623_v5 = vld [vmem:[#allocation32_spill] sm:$0xff] }
 0x15c   :  { %v891_v14 = vmul.f32 %v684_v17, %v1713_v27  ;;  %v892_v29 = vmul.f32 %v684_v17, %v2618_v13  ;;  %v750_v60 = vmul.f32 %v1197_v20, %v749_v30  ;;  %v729_v34 = vsub.f32 1.5, %v728_v7  ;;  %v2624_v7 = vld [vmem:[#allocation33_spill] sm:$0xff]  ;;  %v2625_v17 = vld [vmem:[#allocation40_spill] sm:$0xff] }
 0x15d   :  { %v965_v18 = vmul.f32 %v1926_v33, %v895_v25  ;;  %v966_v2 = vmul.f32 %v1928_v28, %v896_v39  ;;  %v708_v15 = vmul.f32 0.5, %v707_v35  ;;  %v778_v36 = vmul.f32 0.5, %v777_v45 }
 0x15e   :  { %v961_v46 = vmul.f32 %v1926_v33, %v891_v14  ;;  %v962_v12 = vmul.f32 %v1928_v28, %v892_v29  ;;  %v754_v0 = vsel %vm753_vm12, %v1197_v20, %v750_v60  ;;  %v730_v1 = vmul.f32 %v1199_v3, %v729_v34  ;;  %v2626_v14 = vld [vmem:[#allocation41_spill] sm:$0xff]  ;;  %v468_v29 = vpop.xlane.xlu2 %467 }
 0x15f   :  { %v1035_v27 = vadd.f32 %v1931_v16, %v965_v18  ;;  %v1036_v52 = vadd.f32 %v1933_v63, %v966_v2  ;;  %v905_v6 = vmul.f32 %v754_v0, %v2619_v37  ;;  %v906_v41 = vmul.f32 %v754_v0, %v2620_v50 }
 0x160   :  { %v1031_v11 = vadd.f32 %v1931_v16, %v961_v46  ;;  %v1032_v43 = vadd.f32 %v1933_v63, %v962_v12  ;;  %v734_v26 = vsel %vm733_vm13, %v1199_v3, %v730_v1  ;;  %v709_v20 = vsub.f32 1.5, %v708_v15  ;;  %v462_v18 = vpop.xlane.xlu0 %461  ;;  %v474_v46 = vpop.xlane.xlu1 %473 }
 0x161   :  { %1099 = vst [vmem:[#allocation8 + $0xf0] sm:$0xff] %v1035_v27  ;;  %v975_v40 = vmul.f32 %v1926_v33, %v905_v6  ;;  %v976_v31 = vmul.f32 %v1928_v28, %v906_v41  ;;  %v901_v48 = vmul.f32 %v734_v26, %v2621_v32  ;;  %v902_v9 = vmul.f32 %v734_v26, %v2622_v42  ;;  %v2627_v41 = vld [vmem:[#allocation42_spill] sm:$0xff] }
 0x162   :  { %1100 = vst [vmem:[#allocation8 + $0xf8] sm:$0xff] %v1036_v52  ;;  %v710_v10 = vmul.f32 %v2247_v55, %v709_v20  ;;  %v779_v57 = vsub.f32 1.5, %v778_v36  ;;  %v756_v3 = vmul.f32 %v2272_v24, %v2231_v22  ;;  %1206 = vrsqrt.f32 %v2249_v62 }
 0x163   :  { %1095 = vst [vmem:[#allocation8 + $0xd0] sm:$0xff] %v1031_v11  ;;  %v1045_v38 = vadd.f32 %v1931_v16, %v975_v40  ;;  %v1046_v56 = vadd.f32 %v1933_v63, %v976_v31  ;;  %v971_v8 = vmul.f32 %v1926_v33, %v901_v48  ;;  %v972_v49 = vmul.f32 %v1928_v28, %v902_v9 }
 0x164   :  { %1096 = vst [vmem:[#allocation8 + $0xd8] sm:$0xff] %v1032_v43  ;;  %v714_v58 = vsel %vm713_vm14, %v2247_v55, %v710_v10  ;;  %v780_v4 = vmul.f32 %v2253_v21, %v779_v57  ;;  %v757_v51 = vmul.f32 %v2272_v24, %v756_v3  ;;  %vm761_vm0 = vweird.f32 %v2231_v22  ;;  %v2628_v43 = vld [vmem:[#allocation43_spill] sm:$0xff] }
 0x165   :  { %1109 = vst [vmem:[#allocation8 + $0x140] sm:$0xff] %v1045_v38  ;;  %v1041_v44 = vadd.f32 %v1931_v16, %v971_v8  ;;  %v1042_v23 = vadd.f32 %v1933_v63, %v972_v49  ;;  %v897_v30 = vmul.f32 %v714_v58, %v2623_v5  ;;  %v898_v35 = vmul.f32 %v714_v58, %v2624_v7 }
 0x166   :  { %1110 = vst [vmem:[#allocation8 + $0x148] sm:$0xff] %v1046_v56  ;;  %v784_v47 = vsel %vm783_vm15, %v2253_v21, %v780_v4  ;;  %v758_v25 = vmul.f32 0.5, %v757_v51  ;;  %1208 = vrsqrt.f32 %v2251_v19  ;;  %vm762_vm1 = vweird.f32 %v2272_v24  ;;  %v477_v49 = vpop.xlane.xlu2 %476 }
 0x167   :  { %1105 = vst [vmem:[#allocation8 + $0x120] sm:$0xff] %v1041_v44  ;;  %v967_v55 = vmul.f32 %v1926_v33, %v897_v30  ;;  %v968_v39 = vmul.f32 %v1928_v28, %v898_v35  ;;  %v911_v45 = vmul.f32 %v784_v47, %v2625_v17  ;;  %v912_v13 = vmul.f32 %v784_v47, %v2626_v14  ;;  %vm763_vm2 = vmor %vm761_vm0, %vm762_vm1 }
 0x168   :  { %1106 = vst [vmem:[#allocation8 + $0x128] sm:$0xff] %v1042_v23  ;;  %v759_v60 = vsub.f32 1.5, %v758_v25  ;;  %v2332_v21 = vadd.f32 1e-05, %v505_v61  ;;  %v503_v34 = vmul.f32 %v453_v59, %v1559_v53  ;;  %v1207_v12 = vpop.eup %1206  ;;  %vm811_vm3 = vweird.f32 %v2251_v19  ;;  %v471_v51 = vpop.xlane.xlu0 %470 }
 0x169   :  { %v1037_v2 = vadd.f32 %v1931_v16, %v967_v55  ;;  %v1038_v15 = vadd.f32 %v1933_v63, %v968_v39  ;;  %v981_v36 = vmul.f32 %v1926_v33, %v911_v45  ;;  %v982_v54 = vmul.f32 %v1928_v28, %v912_v13  ;;  %v2629_v39 = vld [vmem:[#allocation38_spill] sm:$0xff]  ;;  %v2630_v45 = vld [vmem:[#allocation39_spill] sm:$0xff] }
 0x16a   :  { %v760_v0 = vmul.f32 %v2272_v24, %v759_v60  ;;  %1210 = vrsqrt.f32 %v2332_v21  ;;  %v2341_v1 = vadd.f32 1e-05, %v503_v34  ;;  %v736_v52 = vmul.f32 %v1207_v12, %v2249_v62 }
 0x16b   :  { %1101 = vst [vmem:[#allocation8 + $0x100] sm:$0xff] %v1037_v2  ;;  %v1051_v59 = vadd.f32 %v1931_v16, %v981_v36  ;;  %v1052_v27 = vadd.f32 %v1933_v63, %v982_v54  ;;  %v510_v50 = vmul.f32 %v474_v46, %v1559_v53  ;;  %vm742_vm4 = vweird.f32 %v1207_v12  ;;  %v2631_v36 = vld [vmem:[#allocation12_spill] sm:$0xff]  ;;  %v2632_v46 = vld [vmem:[#allocation13_spill] sm:$0xff] }
 0x16c   :  { %v1209_v37 = vpop.eup %1208  ;;  %1102 = vst [vmem:[#allocation8 + $0x108] sm:$0xff] %v1038_v15  ;;  %v764_v6 = vsel %vm763_vm2, %v2272_v24, %v760_v0  ;;  %1212 = vrsqrt.f32 %v2341_v1  ;;  %v737_v20 = vmul.f32 %v1207_v12, %v736_v52  ;;  %v508_v24 = vmul.f32 %v468_v29, %v1559_v53 }
 0x16d   :  { %1115 = vst [vmem:[#allocation8 + $0x170] sm:$0xff] %v1051_v59  ;;  %v907_v11 = vmul.f32 %v764_v6, %v2627_v41  ;;  %v908_v26 = vmul.f32 %v764_v6, %v2628_v43  ;;  %v806_v22 = vmul.f32 %v1209_v37, %v2251_v19  ;;  %v2357_v40 = vadd.f32 1e-05, %v510_v50 }
 0x16e   :  { %1116 = vst [vmem:[#allocation8 + $0x178] sm:$0xff] %v1052_v27  ;;  %v506_v31 = vmul.f32 %v462_v18, %v1559_v53  ;;  %v738_v42 = vmul.f32 0.5, %v737_v20  ;;  %vm812_vm5 = vweird.f32 %v1209_v37  ;;  %v2366_v57 = vadd.f32 1e-05, %v508_v24 }
 0x16f   :  { %v977_v32 = vmul.f32 %v1926_v33, %v907_v11  ;;  %v978_v48 = vmul.f32 %v1928_v28, %v908_v26  ;;  %v807_v9 = vmul.f32 %v1209_v37, %v806_v22  ;;  %1214 = vrsqrt.f32 %v2357_v40  ;;  %vm813_vm12 = vmor %vm811_vm3, %vm812_vm5 }
 0x170   :  { %v2363_v10 = vpop.eup %1210  ;;  %v2368_v3 = vadd.f32 1e-05, %v506_v31  ;;  %v739_v56 = vsub.f32 1.5, %v738_v42  ;;  %vm741_vm6 = vweird.f32 %v2249_v62  ;;  %vm791_vm7 = vweird.f32 %v2332_v21 }
 0x171   :  { %v1047_v61 = vadd.f32 %v1931_v16, %v977_v32  ;;  %v1048_v38 = vadd.f32 %v1933_v63, %v978_v48  ;;  %v808_v8 = vmul.f32 0.5, %v807_v9  ;;  %v786_v4 = vmul.f32 %v2363_v10, %v2332_v21  ;;  %vm743_vm8 = vmor %vm741_vm6, %vm742_vm4 }
 0x172   :  { %v1213_v58 = vpop.eup %1212  ;;  %1216 = vrsqrt.f32 %v2366_v57  ;;  %v740_v44 = vmul.f32 %v1207_v12, %v739_v56  ;;  %vm792_vm9 = vweird.f32 %v2363_v10  ;;  %vm771_vm10 = vweird.f32 %v2341_v1  ;;  %v2634_v56 = vld [vmem:[#allocation15_spill] sm:$0xff] }
 0x173   :  { %1111 = vst [vmem:[#allocation8 + $0x150] sm:$0xff] %v1047_v61  ;;  %v809_v23 = vsub.f32 1.5, %v808_v8  ;;  %v766_v5 = vmul.f32 %v1213_v58, %v2341_v1  ;;  %vm841_vm11 = vweird.f32 %v2357_v40  ;;  %v787_v62 = vmul.f32 %v2363_v10, %v786_v4  ;;  %vm793_vm0 = vmor %vm791_vm7, %vm792_vm9  ;;  %v2633_v61 = vld [vmem:[#allocation14_spill] sm:$0xff] }
 0x174   :  { %1112 = vst [vmem:[#allocation8 + $0x158] sm:$0xff] %v1048_v38  ;;  %vm772_vm13 = vweird.f32 %v1213_v58  ;;  %1218 = vrsqrt.f32 %v2368_v3  ;;  %v511_v30 = vmul.f32 %v477_v49, %v1559_v53  ;;  %v744_v7 = vsel %vm743_vm8, %v1207_v12, %v740_v44  ;;  %v2635_v49 = vld [vmem:[#allocation44_spill] sm:$0xff] }
 0x175   :  { %v810_v35 = vmul.f32 %v1209_v37, %v809_v23  ;;  %v767_v47 = vmul.f32 %v1213_v58, %v766_v5  ;;  %v2389_v25 = vmul.f32 %v471_v51, %v1559_v53  ;;  %v1215_v55 = vpop.eup %1214  ;;  %v903_v17 = vmul.f32 %v744_v7, %v2629_v39  ;;  %vm773_vm1 = vmor %vm771_vm10, %vm772_vm13  ;;  %v2636_v51 = vld [vmem:[#allocation45_spill] sm:$0xff] }
 0x176   :  { %v904_v14 = vmul.f32 %v744_v7, %v2630_v45  ;;  %v788_v19 = vmul.f32 0.5, %v787_v62  ;;  %v2393_v13 = vadd.f32 1e-05, %v511_v30  ;;  %v836_v34 = vmul.f32 %v1215_v55, %v2357_v40 }
 0x177   :  { %v814_v29 = vsel %vm813_vm12, %v1209_v37, %v810_v35  ;;  %v768_v60 = vmul.f32 0.5, %v767_v47  ;;  %vm842_vm14 = vweird.f32 %v1215_v55  ;;  %vm821_vm15 = vweird.f32 %v2366_v57 }
 0x178   :  { %v1217_v18 = vpop.eup %1216  ;;  %v973_v2 = vmul.f32 %v1926_v33, %v903_v17  ;;  %v974_v15 = vmul.f32 %v1928_v28, %v904_v14  ;;  %v917_v54 = vmul.f32 %v814_v29, %v2631_v36  ;;  %v918_v12 = vmul.f32 %v814_v29, %v2632_v46  ;;  %vm843_vm3 = vmor %vm841_vm11, %vm842_vm14  ;;  %v480_v14 = vpop.xlane.xlu0 %479 }
 0x179   :  { %v789_v0 = vsub.f32 1.5, %v788_v19  ;;  %v769_v59 = vsub.f32 1.5, %v768_v60  ;;  %v837_v27 = vmul.f32 %v1215_v55, %v836_v34  ;;  %v816_v52 = vmul.f32 %v1217_v18, %v2366_v57  ;;  %v2637_v19 = vld [vmem:[#allocation18_spill] sm:$0xff] }
 0x17a   :  { %v2402_v37 = vpop.eup %1218  ;;  %v1043_v6 = vadd.f32 %v1931_v16, %v973_v2  ;;  %v1044_v50 = vadd.f32 %v1933_v63, %v974_v15  ;;  %v987_v41 = vmul.f32 %v1926_v33, %v917_v54  ;;  %v988_v11 = vmul.f32 %v1928_v28, %v918_v12  ;;  %v2639_v15 = vld [vmem:[#allocation20_spill] sm:$0xff]  ;;  %v2640_v54 = vld [vmem:[#allocation21_spill] sm:$0xff] }
 0x17b   :  { %v790_v43 = vmul.f32 %v2363_v10, %v789_v0  ;;  %v770_v26 = vmul.f32 %v1213_v58, %v769_v59  ;;  %v838_v20 = vmul.f32 0.5, %v837_v27  ;;  %v817_v22 = vmul.f32 %v1217_v18, %v816_v52 }
 0x17c   :  { %1107 = vst [vmem:[#allocation8 + $0x130] sm:$0xff] %v1043_v6  ;;  %v1057_v24 = vadd.f32 %v1931_v16, %v987_v41  ;;  %v1058_v31 = vadd.f32 %v1933_v63, %v988_v11  ;;  %vm822_vm2 = vweird.f32 %v1217_v18  ;;  %v796_v32 = vmul.f32 %v2402_v37, %v2368_v3 }
 0x17d   :  { %1108 = vst [vmem:[#allocation8 + $0x138] sm:$0xff] %v1044_v50  ;;  %v794_v21 = vsel %vm793_vm0, %v2363_v10, %v790_v43  ;;  %v774_v48 = vsel %vm773_vm1, %v1213_v58, %v770_v26  ;;  %v839_v42 = vsub.f32 1.5, %v838_v20  ;;  %v818_v9 = vmul.f32 0.5, %v817_v22  ;;  %vm823_vm5 = vmor %vm821_vm15, %vm822_vm2  ;;  %v2641_v43 = vld [vmem:[#allocation16_spill] sm:$0xff]  ;;  %v2642_v20 = vld [vmem:[#allocation17_spill] sm:$0xff] }
 0x17e   :  { %1121 = vst [vmem:[#allocation8 + $0x1a0] sm:$0xff] %v1057_v24  ;;  %v913_v38 = vmul.f32 %v794_v21, %v2633_v61  ;;  %v914_v8 = vmul.f32 %v794_v21, %v2634_v56  ;;  %v909_v4 = vmul.f32 %v774_v48, %v2635_v49  ;;  %v910_v1 = vmul.f32 %v774_v48, %v2636_v51 }
 0x17f   :  { %1122 = vst [vmem:[#allocation8 + $0x1a8] sm:$0xff] %v1058_v31  ;;  %v840_v44 = vmul.f32 %v1215_v55, %v839_v42  ;;  %v819_v23 = vsub.f32 1.5, %v818_v9  ;;  %v797_v10 = vmul.f32 %v2402_v37, %v796_v32  ;;  %vm802_vm4 = vweird.f32 %v2402_v37 }
 0x180   :  { %v983_v58 = vmul.f32 %v1926_v33, %v913_v38  ;;  %v984_v5 = vmul.f32 %v1928_v28, %v914_v8  ;;  %v979_v62 = vmul.f32 %v1926_v33, %v909_v4  ;;  %v980_v30 = vmul.f32 %v1928_v28, %v910_v1 }
 0x181   :  { %v844_v7 = vsel %vm843_vm3, %v1215_v55, %v840_v44  ;;  %v820_v35 = vmul.f32 %v1217_v18, %v819_v23  ;;  %v798_v47 = vmul.f32 0.5, %v797_v10  ;;  %1220 = vrsqrt.f32 %v2393_v13  ;;  %v2638_v55 = vld [vmem:[#allocation19_spill] sm:$0xff]  ;;  %v2643_v10 = vld [vmem:[#allocation24_spill] sm:$0xff] }
 0x182   :  { %v1053_v40 = vadd.f32 %v1931_v16, %v983_v58  ;;  %v1054_v39 = vadd.f32 %v1933_v63, %v984_v5  ;;  %v1049_v17 = vadd.f32 %v1931_v16, %v979_v62  ;;  %v1050_v45 = vadd.f32 %v1933_v63, %v980_v30  ;;  %v2644_v5 = vld [vmem:[#allocation25_spill] sm:$0xff] }
 0x183   :  { %v923_v29 = vmul.f32 %v844_v7, %v2637_v19  ;;  %v924_v60 = vmul.f32 %v844_v7, %v2638_v55  ;;  %v824_v34 = vsel %vm823_vm5, %v1217_v18, %v820_v35  ;;  %v799_v2 = vsub.f32 1.5, %v798_v47  ;;  %v2646_v19 = vld [vmem:[#allocation23_spill] sm:$0xff] }
 0x184   :  { %1117 = vst [vmem:[#allocation8 + $0x180] sm:$0xff] %v1053_v40  ;;  %v919_v36 = vmul.f32 %v824_v34, %v2639_v15  ;;  %v920_v46 = vmul.f32 %v824_v34, %v2640_v54  ;;  %vm801_vm6 = vweird.f32 %v2368_v3  ;;  %v541_v12 = vadd.f32 1e-05, %v2389_v25  ;;  %v2647_v54 = vld [vmem:[#allocation46_spill] sm:$0xff] }
 0x185   :  { %1118 = vst [vmem:[#allocation8 + $0x188] sm:$0xff] %v1054_v39  ;;  %v993_v57 = vmul.f32 %v1926_v33, %v923_v29  ;;  %v994_v0 = vmul.f32 %v1928_v28, %v924_v60  ;;  %v800_v59 = vmul.f32 %v2402_v37, %v799_v2  ;;  %v512_v27 = vmul.f32 %v480_v14, %v1559_v53  ;;  %vm803_vm7 = vmor %vm801_vm6, %vm802_vm4 }
 0x186   :  { %1113 = vst [vmem:[#allocation8 + $0x160] sm:$0xff] %v1049_v17  ;;  %v989_v18 = vmul.f32 %v1926_v33, %v919_v36  ;;  %v990_v52 = vmul.f32 %v1928_v28, %v920_v46  ;;  %1222 = vrsqrt.f32 %v541_v12  ;;  %vm851_vm8 = vweird.f32 %v2393_v13 }
 0x187   :  { %v1221_v3 = vpop.eup %1220  ;;  %1114 = vst [vmem:[#allocation8 + $0x168] sm:$0xff] %v1050_v45  ;;  %v1063_v25 = vadd.f32 %v1931_v16, %v993_v57  ;;  %v1064_v6 = vadd.f32 %v1933_v63, %v994_v0  ;;  %v804_v50 = vsel %vm803_vm7, %v2402_v37, %v800_v59  ;;  %v544_v41 = vadd.f32 1e-05, %v512_v27  ;;  %v2645_v45 = vld [vmem:[#allocation22_spill] sm:$0xff] }
 0x188   :  { %v1059_v53 = vadd.f32 %v1931_v16, %v989_v18  ;;  %v1060_v11 = vadd.f32 %v1933_v63, %v990_v52  ;;  %v915_v26 = vmul.f32 %v804_v50, %v2641_v43  ;;  %v916_v22 = vmul.f32 %v804_v50, %v2642_v20 }
 0x189   :  { %1127 = vst [vmem:[#allocation8 + $0x1d0] sm:$0xff] %v1063_v25  ;;  %v846_v24 = vmul.f32 %v1221_v3, %v2393_v13  ;;  %1224 = vrsqrt.f32 %v544_v41  ;;  %vm852_vm9 = vweird.f32 %v1221_v3  ;;  %vm831_vm12 = vweird.f32 %v541_v12 }
 0x18a   :  { %1128 = vst [vmem:[#allocation8 + $0x1d8] sm:$0xff] %v1064_v6  ;;  %v985_v31 = vmul.f32 %v1926_v33, %v915_v26  ;;  %v986_v32 = vmul.f32 %v1928_v28, %v916_v22  ;;  %vm853_vm10 = vmor %vm851_vm8, %vm852_vm9  ;;  %vm861_vm15 = vweird.f32 %v544_v41 }
 0x18b   :  { %1123 = vst [vmem:[#allocation8 + $0x1b0] sm:$0xff] %v1059_v53  ;;  %v847_v37 = vmul.f32 %v1221_v3, %v846_v24 }
 0x18c   :  { %v1223_v21 = vpop.eup %1222  ;;  %1124 = vst [vmem:[#allocation8 + $0x1b8] sm:$0xff] %v1060_v11  ;;  %v1055_v48 = vadd.f32 %v1931_v16, %v985_v31  ;;  %v1056_v42 = vadd.f32 %v1933_v63, %v986_v32 }
 0x18d   :  { %v848_v9 = vmul.f32 0.5, %v847_v37  ;;  %v826_v61 = vmul.f32 %v1223_v21, %v541_v12  ;;  %vm832_vm11 = vweird.f32 %v1223_v21  ;;  %v2648_v12 = vld [vmem:[#allocation47_spill] sm:$0xff] }
 0x18e   :  { %1119 = vst [vmem:[#allocation8 + $0x190] sm:$0xff] %v1055_v48  ;;  %vm833_vm13 = vmor %vm831_vm12, %vm832_vm11 }
 0x18f   :  { %v1225_v38 = vpop.eup %1224  ;;  %1120 = vst [vmem:[#allocation8 + $0x198] sm:$0xff] %v1056_v42  ;;  %v849_v56 = vsub.f32 1.5, %v848_v9  ;;  %v827_v8 = vmul.f32 %v1223_v21, %v826_v61 }
 0x190   :  { %v856_v49 = vmul.f32 %v1225_v38, %v544_v41  ;;  %vm862_vm14 = vweird.f32 %v1225_v38 }
 0x191   :  { %v850_v4 = vmul.f32 %v1221_v3, %v849_v56  ;;  %v828_v51 = vmul.f32 0.5, %v827_v8  ;;  %vm863_vm0 = vmor %vm861_vm15, %vm862_vm14 }
 0x192   :  { %v857_v1 = vmul.f32 %v1225_v38, %v856_v49 }
 0x193   :  { %v854_v44 = vsel %vm853_vm10, %v1221_v3, %v850_v4  ;;  %v829_v23 = vsub.f32 1.5, %v828_v51 }
 0x194   :  { %v925_v58 = vmul.f32 %v854_v44, %v2643_v10  ;;  %v926_v62 = vmul.f32 %v854_v44, %v2644_v5  ;;  %v858_v30 = vmul.f32 0.5, %v857_v1 }
 0x195   :  { %v830_v7 = vmul.f32 %v1223_v21, %v829_v23 }
 0x196   :  { %v995_v35 = vmul.f32 %v1926_v33, %v925_v58  ;;  %v996_v13 = vmul.f32 %v1928_v28, %v926_v62  ;;  %v859_v47 = vsub.f32 1.5, %v858_v30 }
 0x197   :  { %v834_v40 = vsel %vm833_vm13, %v1223_v21, %v830_v7 }
 0x198   :  { %v1065_v39 = vadd.f32 %v1931_v16, %v995_v35  ;;  %v1066_v17 = vadd.f32 %v1933_v63, %v996_v13  ;;  %v921_v14 = vmul.f32 %v834_v40, %v2645_v45  ;;  %v922_v29 = vmul.f32 %v834_v40, %v2646_v19 }
 0x199   :  { %v860_v55 = vmul.f32 %v1225_v38, %v859_v47 }
 0x19a   :  { %1129 = vst [vmem:[#allocation8 + $0x1e0] sm:$0xff] %v1065_v39  ;;  %v991_v60 = vmul.f32 %v1926_v33, %v921_v14  ;;  %v992_v34 = vmul.f32 %v1928_v28, %v922_v29 }
 0x19b   :  { %1130 = vst [vmem:[#allocation8 + $0x1e8] sm:$0xff] %v1066_v17  ;;  %v864_v2 = vsel %vm863_vm0, %v1225_v38, %v860_v55 }
 0x19c   :  { %v1061_v15 = vadd.f32 %v1931_v16, %v991_v60  ;;  %v1062_v36 = vadd.f32 %v1933_v63, %v992_v34  ;;  %v927_v46 = vmul.f32 %v864_v2, %v2647_v54  ;;  %v928_v57 = vmul.f32 %v864_v2, %v2648_v12 }
 0x19e   :  { %1125 = vst [vmem:[#allocation8 + $0x1c0] sm:$0xff] %v1061_v15  ;;  %v997_v0 = vmul.f32 %v1926_v33, %v927_v46  ;;  %v998_v59 = vmul.f32 %v1928_v28, %v928_v57 }
 0x19f   :  { %1126 = vst [vmem:[#allocation8 + $0x1c8] sm:$0xff] %v1062_v36 }
 0x1a0   :  { %v1067_v27 = vadd.f32 %v1931_v16, %v997_v0  ;;  %v1068_v18 = vadd.f32 %v1933_v63, %v998_v59 }
 0x1a2   :  { %1131 = vst [vmem:[#allocation8 + $0x1f0] sm:$0xff] %v1067_v27 }
 0x1a3   :  { %1132 = vst [vmem:[#allocation8 + $0x1f8] sm:$0xff] %v1068_v18 }
 0x1a4   :  { %1145 = dma.vmem_to_hbm [thread:$0]  %s1138_s2, 8192, %s1140_s30, [#allocation4], %s1330_s22, %s1330_s22, %s1331_s23  }
 0x1a5   :  { %1326 = dma.done.wait [#allocation4], 8192  }
 0x1a6   :  { %1327 = vsyncadd [#allocation4], 4294959104 }
 0x1a7   :  { %1150 = vsyncpa [#allocation3], 1 }
 0x1a8   :  { %1151 = vsyncpa [#allocation6], 1 }
 0x1a9   :  { %1152 = vsyncpa [#allocation4], 1 }

</bundles_post_ra>
